<compile_context>
chip_gen: v7x
topology: tpu7x:2x2x1
jax: 0.10.0
libtpu: 0.0.40
codegen_flags: <defaults>
</compile_context>

<pallas_src>
import numpy as np
import jax
import jax.numpy as jnp
from jax import lax
from jax.experimental import pallas as pl
from jax.experimental.pallas import tpu as pltpu

D_IN, D_OUT, D_HIDDEN, N_LAYERS = 3, 1, 64, 4
SKIP = 2
N_SAMPLES = 128          # DiffCluster.forward: self.sample(z, 128)
NOISE_STD = 0.2
BETA = 100.0             # SDFNetwork softplus beta (folded into the weights)
SQRT2 = float(np.sqrt(2.0))


def _softplus(x, beta=1.0):
    # numerically stable softplus matching torch.nn.functional.softplus(x, beta)
    xb = x * beta
    return (jnp.maximum(xb, 0.0) + jnp.log1p(jnp.exp(-jnp.abs(xb)))) / beta


# ----------------------------------------------------------------------------- kernel --
def _make_kernel(bpt, n, B):
    """One grid step processes `bpt` batches (= bpt*n rows); padded tail batches masked."""
    R = bpt * n
    inv_B = 1.0 / B
    pad_lanes = D_HIDDEN - D_IN

    def kernel(zlast_ref, noise_ref, w0, b0, w1, b1, w2, b2, w3, b3, w4, b4, out_ref):
        t = pl.program_id(0)

        # --- fused sample construction: x = z[:, -1] broadcast over n + (0.2*noise) ---
        zl = zlast_ref[pl.ds(t * bpt, bpt), :]                          # (bpt, 64) f32
        zb = jnp.broadcast_to(zl[:, None, :], (bpt, n, D_HIDDEN)).reshape(R, D_HIDDEN)
        n3 = noise_ref[...].astype(jnp.float32)                         # (R, 3), pre-scaled
        n64 = jnp.concatenate(
            [n3, jnp.zeros((R, pad_lanes), jnp.float32)], axis=-1)      # lanes 3..63 zero
        x0 = (zb + n64).astype(jnp.bfloat16)                            # (R, 64); lanes 0..2 real

        # bf16 operands, f32 accumulation on the MXU
        dot = lambda a, w: jnp.dot(a, w[...], preferred_element_type=jnp.float32)
        # softplus with beta=100 folded into the params; f32 math (v5e-safe), bf16 output
        sp = lambda v: (jnp.maximum(v, 0.0)
                        + jnp.log1p(jnp.exp(-jnp.abs(v)))).astype(jnp.bfloat16)

        h = sp(dot(x0, w0) + b0[...])        # = 100*h1 (zero rows of W0 kill lanes 3..63)
        h = sp(dot(h, w1) + b1[...])         # = 100*h2, written to lanes 3..63
        # skip connection cat([h, x]): splice the raw sample into lanes 0..2
        lane = lax.broadcasted_iota(jnp.int32, (1, D_HIDDEN), 1)
        h = jnp.where(lane < D_IN, x0, h)
        h = sp(dot(h, w2) + b2[...])         # = 100*h3 (1/sqrt(2) folded into W2)
        h = sp(dot(h, w3) + b3[...])         # = 100*h4
        pre = dot(h, w4) + b4[...]           # (R, 1) = sdf - 10 (1/100 and -10 folded)
        wv = jnp.maximum(pre, 0.0) + jnp.log1p(jnp.exp(-jnp.abs(pre)))  # f32 weight_act

        # --- per-batch segment reduction (one reshaped sublane reduce) + tail mask ---
        acc = jnp.sum(wv.reshape(bpt, n, 1), axis=1)                    # (bpt, 1)
        bidx = t * bpt + lax.broadcasted_iota(jnp.int32, (bpt, 1), 0)
        terms = jnp.where(bidx < B, jnp.abs(acc - 1.0), 0.0)            # padded batches -> 0
        part = jnp.sum(terms) * inv_B

        # lane-dense (1, 8, 128) store of this tile's partial loss (already scaled by 1/B)
        out_ref[...] = jnp.broadcast_to(part, out_ref.shape)

    return kernel


# ------------------------------------------------------------------------- parameters --
def _fold_params(logical):
    """Fold beta=100, 1/sqrt(2), the -10 shift and the skip/lane layout into the weights.
    Weights are stored bf16 (MXU-native); biases stay f32 (added to f32 accumulators)."""
    w0, b0, w1, b1, w2a, w2b, b2, w3, b3, w4, b4 = logical
    inv_s2 = 1.0 / SQRT2
    # layer 0: sample lives in lanes 0..2 of the 64-wide x0; rows 3..63 are zero.
    w0k = jnp.zeros((D_HIDDEN, D_HIDDEN), jnp.float32).at[:D_IN].set(BETA * w0)
    b0k = BETA * b0
    # layer 1: write its 61 features to lanes 3..63 (lanes 0..2 reserved for the skip x).
    w1k = jnp.zeros((D_HIDDEN, D_HIDDEN), jnp.float32).at[:, D_IN:].set(w1)
    b1k = jnp.zeros((1, D_HIDDEN), jnp.float32).at[:, D_IN:].set(BETA * b1)
    # layer 2 (skip, fused): rows 0..2 act on the raw x, rows 3..63 on the 100*h features.
    w2k = jnp.concatenate([BETA * inv_s2 * w2b, inv_s2 * w2a], axis=0)
    b2k = BETA * b2
    w3k = w3
    b3k = BETA * b3
    w4k = w4 / BETA
    b4k = b4 - 10.0                      # weight_act: softplus(x - 10)
    bf = lambda w: w.astype(jnp.bfloat16)
    return (bf(w0k), b0k, bf(w1k), b1k, bf(w2k), b2k, bf(w3k), b3k, bf(w4k), b4k)


def init_params(key):
    """Deterministic synthetic init of SDFNetwork(3, 1, 64, 4, (2,)) parameters."""
    ks = jax.random.split(key, 5)

    def lin(k, fi, fo):
        kw, kb = jax.random.split(k)
        w = jax.random.normal(kw, (fi, fo), jnp.float32) / np.sqrt(fi)
        b = 0.01 * jax.random.normal(kb, (1, fo), jnp.float32)
        return w, b

    d_skip = D_HIDDEN - D_IN                              # 61
    w0, b0 = lin(ks[0], D_IN, D_HIDDEN)                   # l=0: 3  -> 64
    w1, b1 = lin(ks[1], D_HIDDEN, d_skip)                 # l=1: 64 -> 61 (skip at l=2)
    w2, b2 = lin(ks[2], D_HIDDEN, D_HIDDEN)               # l=2: (61+3) -> 64
    w3, b3 = lin(ks[3], D_HIDDEN, D_HIDDEN)               # l=3: 64 -> 64
    w4, b4 = lin(ks[4], D_HIDDEN, D_OUT)                  # l=4: 64 -> 1
    w2a, w2b = w2[:d_skip], w2[d_skip:]                   # h-part / x-part of the skip

    logical = (w0, b0, w1, b1, w2a, w2b, b2, w3, b3, w4, b4)
    return logical, _fold_params(logical)


# ---------------------------------------------------------------------------- wrapper --
def _pick_bpt(B):
    """Batches per tile: >= 4 tiles when possible (so v7x's two TensorCores each get >= 2
    tiles and stay pipelined), at most 32 batches (= 4096 rows) per tile, no divisibility
    requirement (the tail tile is zero-padded and masked in-kernel)."""
    target_tiles = max(4, pl.cdiv(B, 32))
    return max(1, pl.cdiv(B, target_tiles))


@jax.jit
def diff_cluster_forward(z, kernel_params, noise):
    """DiffCluster.forward: z (B, S, 3); noise (B*128, 3) bf16, already scaled by 0.2."""
    B = z.shape[0]
    n = N_SAMPLES
    bpt = _pick_bpt(B)
    G = pl.cdiv(B, bpt)
    Bp = G * bpt
    R = bpt * n

    # z[:, -1] in lanes 0..2 of a 64-wide row; lanes 3..63 and padded tail batches are zero
    zlast_w = jnp.pad(z[:, -1, :].astype(jnp.float32),
                      ((0, Bp - B), (0, D_HIDDEN - D_IN)))
    noise_p = jnp.pad(noise, ((0, (Bp - B) * n), (0, 0)))

    full = lambda shape: pl.BlockSpec(shape, lambda t, _s=shape: (0,) * len(_s))
    in_specs = [
        full((Bp, D_HIDDEN)),                               # zlast (tiny constant block)
        pl.BlockSpec((R, D_IN), lambda t: (t, 0)),          # packed bf16 noise row tile
        full((D_HIDDEN, D_HIDDEN)), full((1, D_HIDDEN)),    # w0, b0
        full((D_HIDDEN, D_HIDDEN)), full((1, D_HIDDEN)),    # w1, b1
        full((D_HIDDEN, D_HIDDEN)), full((1, D_HIDDEN)),    # w2 (fused skip), b2
        full((D_HIDDEN, D_HIDDEN)), full((1, D_HIDDEN)),    # w3, b3
        full((D_HIDDEN, D_OUT)), full((1, D_OUT)),          # w4, b4
    ]
    out_specs = pl.BlockSpec((1, 8, 128), lambda t: (t, 0, 0))

    parts = pl.pallas_call(
        _make_kernel(bpt, n, B),
        out_shape=jax.ShapeDtypeStruct((G, 8, 128), jnp.float32),
        grid=(G,),
        in_specs=in_specs,
        out_specs=out_specs,
        compiler_params=pltpu.CompilerParams(dimension_semantics=("parallel",)),
    )(zlast_w, noise_p, *kernel_params)

    return parts[:, 0, 0].sum()      # per-tile partials (already /B) -> scalar loss


# -------------------------------------------------------------------------- reference --
def diff_cluster_ref(z, logical_params, noise_scaled):
    """Pure-JAX f32 reference mirroring the PyTorch semantics (61-wide skip layer)."""
    w0, b0, w1, b1, w2a, w2b, b2, w3, b3, w4, b4 = logical_params
    B = z.shape[0]
    n = N_SAMPLES
    noise = noise_scaled.astype(jnp.float32).reshape(B, n, D_IN)      # already *0.2
    zs = jnp.broadcast_to(z[:, -1:, :], (B, n, D_IN)) + noise
    x0 = zs.reshape(B * n, D_IN)
    hp = lambda a, w: jnp.dot(a, w, precision=lax.Precision.HIGHEST)
    h = _softplus(hp(x0, w0) + b0, BETA)
    h = _softplus(hp(h, w1) + b1, BETA)
    h = _softplus((hp(h, w2a) + hp(x0, w2b)) / SQRT2 + b2, BETA)
    h = _softplus(hp(h, w3) + b3, BETA)
    sdf = hp(h, w4) + b4
    w = _softplus(sdf - 10.0)
    acc = w.reshape(B, n, D_OUT).sum(axis=-2)
    return jnp.abs(acc - 1.0).mean()


if __name__ == "__main__":
    key = jax.random.PRNGKey(0)
    k_z, k_noise, k_p = jax.random.split(key, 3)

    B, S = 2, 8
    z = jax.random.normal(k_z, (B, S, D_IN), jnp.float32)
    # torch.randn_like noise, packed to the 3 used lanes, pre-scaled by 0.2 and stored in
    # bf16 so only ~6 bytes/sample ever hit HBM; both the kernel and the pure-JAX
    # reference consume these identical bf16 values.
    noise = (NOISE_STD * jax.random.normal(
        k_noise, (B * N_SAMPLES, D_IN), jnp.float32)).astype(jnp.bfloat16)

    logical_params, kernel_params = init_params(k_p)

    out = diff_cluster_forward(z, kernel_params, noise)
    out = jax.block_until_ready(out)

    ref = diff_cluster_ref(z, logical_params, noise)
    # rtol widened vs. the f32 version: weights/activations intentionally flow in bf16.
    np.testing.assert_allclose(np.asarray(out), np.asarray(ref), rtol=1e-2, atol=2e-4)

    print("KERNEL_OK")
</pallas_src>

<mosaic_0001>
module attributes {stable_mosaic.version = 11 : i64} {
  func.func @kernel(%arg0: i32, %arg1: memref<2x64xf32, #tpu.memory_space<vmem>>, %arg2: memref<128x3xbf16, #tpu.memory_space<vmem>>, %arg3: memref<64x64xbf16, #tpu.memory_space<vmem>>, %arg4: memref<1x64xf32, #tpu.memory_space<vmem>>, %arg5: memref<64x64xbf16, #tpu.memory_space<vmem>>, %arg6: memref<1x64xf32, #tpu.memory_space<vmem>>, %arg7: memref<64x64xbf16, #tpu.memory_space<vmem>>, %arg8: memref<1x64xf32, #tpu.memory_space<vmem>>, %arg9: memref<64x64xbf16, #tpu.memory_space<vmem>>, %arg10: memref<1x64xf32, #tpu.memory_space<vmem>>, %arg11: memref<64x1xbf16, #tpu.memory_space<vmem>>, %arg12: memref<1x1xf32, #tpu.memory_space<vmem>>, %arg13: memref<1x8x128xf32, #tpu.memory_space<vmem>>) attributes {dimension_semantics = [#tpu.dimension_semantics<parallel>], iteration_bounds = array<i64: 2>, scalar_prefetch = 0 : i64, scratch_operands = 0 : i64, tpu.core_type = #tpu.core_type<tc>, window_params = [{pipeline_mode = #tpu.pipeline_mode<synchronous>, transform_indices = @transform_0, window_bounds = array<i64: 2, 64>}, {transform_indices = @transform_1, window_bounds = array<i64: 128, 3>}, {pipeline_mode = #tpu.pipeline_mode<synchronous>, transform_indices = @transform_2, window_bounds = array<i64: 64, 64>}, {pipeline_mode = #tpu.pipeline_mode<synchronous>, transform_indices = @transform_3, window_bounds = array<i64: 1, 64>}, {pipeline_mode = #tpu.pipeline_mode<synchronous>, transform_indices = @transform_4, window_bounds = array<i64: 64, 64>}, {pipeline_mode = #tpu.pipeline_mode<synchronous>, transform_indices = @transform_5, window_bounds = array<i64: 1, 64>}, {pipeline_mode = #tpu.pipeline_mode<synchronous>, transform_indices = @transform_6, window_bounds = array<i64: 64, 64>}, {pipeline_mode = #tpu.pipeline_mode<synchronous>, transform_indices = @transform_7, window_bounds = array<i64: 1, 64>}, {pipeline_mode = #tpu.pipeline_mode<synchronous>, transform_indices = @transform_8, window_bounds = array<i64: 64, 64>}, {pipeline_mode = #tpu.pipeline_mode<synchronous>, transform_indices = @transform_9, window_bounds = array<i64: 1, 64>}, {pipeline_mode = #tpu.pipeline_mode<synchronous>, transform_indices = @transform_10, window_bounds = array<i64: 64, 1>}, {pipeline_mode = #tpu.pipeline_mode<synchronous>, transform_indices = @transform_11, window_bounds = array<i64: 1, 1>}, {transform_indices = @transform_12, window_bounds = array<i64: 1, 8, 128>}]} {
    %c1_i32 = arith.constant 1 : i32
    %0 = arith.muli %arg0, %c1_i32 : i32
    %1 = arith.index_cast %0 : i32 to index
    %c0 = arith.constant 0 : index
    %2 = vector.load %arg1[%1, %c0] : memref<2x64xf32, #tpu.memory_space<vmem>>, vector<1x64xf32>
    %3 = vector.shape_cast %2 : vector<1x64xf32> to vector<1x1x64xf32>
    %4 = vector.shape_cast %3 : vector<1x1x64xf32> to vector<1x1x64xf32>
    %5 = vector.broadcast %4 : vector<1x1x64xf32> to vector<1x128x64xf32>
    %6 = vector.shape_cast %5 : vector<1x128x64xf32> to vector<128x64xf32>
    %c0_0 = arith.constant 0 : index
    %c0_1 = arith.constant 0 : index
    %7 = vector.load %arg2[%c0_0, %c0_1] : memref<128x3xbf16, #tpu.memory_space<vmem>>, vector<128x3xbf16>
    %8 = arith.extf %7 : vector<128x3xbf16> to vector<128x3xf32>
    %cst = arith.constant 0.000000e+00 : f32
    %9 = vector.broadcast %cst : f32 to vector<128x61xf32>
    %10 = tpu.concatenate %8, %9 in 1 : vector<128x3xf32>, vector<128x61xf32> -> vector<128x64xf32>
    %11 = arith.addf %6, %10 : vector<128x64xf32>
    %12 = arith.truncf %11 : vector<128x64xf32> to vector<128x64xbf16>
    %c0_2 = arith.constant 0 : index
    %c0_3 = arith.constant 0 : index
    %13 = vector.load %arg3[%c0_2, %c0_3] : memref<64x64xbf16, #tpu.memory_space<vmem>>, vector<64x64xbf16>
    %cst_4 = arith.constant dense<0.000000e+00> : vector<128x64xf32>
    %14 = tpu.matmul %12, %13, %cst_4 {dimension_numbers = #tpu.dot_dimension_numbers<[1], [0], [0], [1], [0, 0, 1, 1], [], []>} : vector<128x64xbf16>, vector<64x64xbf16>, vector<128x64xf32> -> vector<128x64xf32>
    %c0_5 = arith.constant 0 : index
    %c0_6 = arith.constant 0 : index
    %15 = vector.load %arg4[%c0_5, %c0_6] : memref<1x64xf32, #tpu.memory_space<vmem>>, vector<1x64xf32>
    %16 = vector.broadcast %15 : vector<1x64xf32> to vector<128x64xf32>
    %17 = arith.addf %14, %16 : vector<128x64xf32>
    %cst_7 = arith.constant 0.000000e+00 : f32
    %18 = vector.broadcast %cst_7 : f32 to vector<128x64xf32>
    %19 = arith.maximumf %17, %18 : vector<128x64xf32>
    %20 = math.absf %17 : vector<128x64xf32>
    %cst_8 = arith.constant 0.000000e+00 : f32
    %21 = vector.broadcast %cst_8 : f32 to vector<128x64xf32>
    %22 = arith.subf %21, %20 : vector<128x64xf32>
    %23 = math.exp %22 : vector<128x64xf32>
    %24 = math.log1p %23 : vector<128x64xf32>
    %25 = arith.addf %19, %24 : vector<128x64xf32>
    %26 = arith.truncf %25 : vector<128x64xf32> to vector<128x64xbf16>
    %c0_9 = arith.constant 0 : index
    %c0_10 = arith.constant 0 : index
    %27 = vector.load %arg5[%c0_9, %c0_10] : memref<64x64xbf16, #tpu.memory_space<vmem>>, vector<64x64xbf16>
    %cst_11 = arith.constant dense<0.000000e+00> : vector<128x64xf32>
    %28 = tpu.matmul %26, %27, %cst_11 {dimension_numbers = #tpu.dot_dimension_numbers<[1], [0], [0], [1], [0, 0, 1, 1], [], []>} : vector<128x64xbf16>, vector<64x64xbf16>, vector<128x64xf32> -> vector<128x64xf32>
    %c0_12 = arith.constant 0 : index
    %c0_13 = arith.constant 0 : index
    %29 = vector.load %arg6[%c0_12, %c0_13] : memref<1x64xf32, #tpu.memory_space<vmem>>, vector<1x64xf32>
    %30 = vector.broadcast %29 : vector<1x64xf32> to vector<128x64xf32>
    %31 = arith.addf %28, %30 : vector<128x64xf32>
    %cst_14 = arith.constant 0.000000e+00 : f32
    %32 = vector.broadcast %cst_14 : f32 to vector<128x64xf32>
    %33 = arith.maximumf %31, %32 : vector<128x64xf32>
    %34 = math.absf %31 : vector<128x64xf32>
    %cst_15 = arith.constant 0.000000e+00 : f32
    %35 = vector.broadcast %cst_15 : f32 to vector<128x64xf32>
    %36 = arith.subf %35, %34 : vector<128x64xf32>
    %37 = math.exp %36 : vector<128x64xf32>
    %38 = math.log1p %37 : vector<128x64xf32>
    %39 = arith.addf %33, %38 : vector<128x64xf32>
    %40 = arith.truncf %39 : vector<128x64xf32> to vector<128x64xbf16>
    %41 = tpu.iota {dimensions = array<i32: 1>} : vector<1x64xi32>
    %c3_i32 = arith.constant 3 : i32
    %42 = vector.broadcast %c3_i32 : i32 to vector<1x64xi32>
    %43 = arith.cmpi slt, %41, %42 : vector<1x64xi32>
    %44 = vector.shape_cast %43 : vector<1x64xi1> to vector<1x64xi1>
    %45 = vector.broadcast %44 : vector<1x64xi1> to vector<128x64xi1>
    %46 = arith.select %45, %12, %40 : vector<128x64xi1>, vector<128x64xbf16>
    %c0_16 = arith.constant 0 : index
    %c0_17 = arith.constant 0 : index
    %47 = vector.load %arg7[%c0_16, %c0_17] : memref<64x64xbf16, #tpu.memory_space<vmem>>, vector<64x64xbf16>
    %cst_18 = arith.constant dense<0.000000e+00> : vector<128x64xf32>
    %48 = tpu.matmul %46, %47, %cst_18 {dimension_numbers = #tpu.dot_dimension_numbers<[1], [0], [0], [1], [0, 0, 1, 1], [], []>} : vector<128x64xbf16>, vector<64x64xbf16>, vector<128x64xf32> -> vector<128x64xf32>
    %c0_19 = arith.constant 0 : index
    %c0_20 = arith.constant 0 : index
    %49 = vector.load %arg8[%c0_19, %c0_20] : memref<1x64xf32, #tpu.memory_space<vmem>>, vector<1x64xf32>
    %50 = vector.broadcast %49 : vector<1x64xf32> to vector<128x64xf32>
    %51 = arith.addf %48, %50 : vector<128x64xf32>
    %cst_21 = arith.constant 0.000000e+00 : f32
    %52 = vector.broadcast %cst_21 : f32 to vector<128x64xf32>
    %53 = arith.maximumf %51, %52 : vector<128x64xf32>
    %54 = math.absf %51 : vector<128x64xf32>
    %cst_22 = arith.constant 0.000000e+00 : f32
    %55 = vector.broadcast %cst_22 : f32 to vector<128x64xf32>
    %56 = arith.subf %55, %54 : vector<128x64xf32>
    %57 = math.exp %56 : vector<128x64xf32>
    %58 = math.log1p %57 : vector<128x64xf32>
    %59 = arith.addf %53, %58 : vector<128x64xf32>
    %60 = arith.truncf %59 : vector<128x64xf32> to vector<128x64xbf16>
    %c0_23 = arith.constant 0 : index
    %c0_24 = arith.constant 0 : index
    %61 = vector.load %arg9[%c0_23, %c0_24] : memref<64x64xbf16, #tpu.memory_space<vmem>>, vector<64x64xbf16>
    %cst_25 = arith.constant dense<0.000000e+00> : vector<128x64xf32>
    %62 = tpu.matmul %60, %61, %cst_25 {dimension_numbers = #tpu.dot_dimension_numbers<[1], [0], [0], [1], [0, 0, 1, 1], [], []>} : vector<128x64xbf16>, vector<64x64xbf16>, vector<128x64xf32> -> vector<128x64xf32>
    %c0_26 = arith.constant 0 : index
    %c0_27 = arith.constant 0 : index
    %63 = vector.load %arg10[%c0_26, %c0_27] : memref<1x64xf32, #tpu.memory_space<vmem>>, vector<1x64xf32>
    %64 = vector.broadcast %63 : vector<1x64xf32> to vector<128x64xf32>
    %65 = arith.addf %62, %64 : vector<128x64xf32>
    %cst_28 = arith.constant 0.000000e+00 : f32
    %66 = vector.broadcast %cst_28 : f32 to vector<128x64xf32>
    %67 = arith.maximumf %65, %66 : vector<128x64xf32>
    %68 = math.absf %65 : vector<128x64xf32>
    %cst_29 = arith.constant 0.000000e+00 : f32
    %69 = vector.broadcast %cst_29 : f32 to vector<128x64xf32>
    %70 = arith.subf %69, %68 : vector<128x64xf32>
    %71 = math.exp %70 : vector<128x64xf32>
    %72 = math.log1p %71 : vector<128x64xf32>
    %73 = arith.addf %67, %72 : vector<128x64xf32>
    %74 = arith.truncf %73 : vector<128x64xf32> to vector<128x64xbf16>
    %c0_30 = arith.constant 0 : index
    %c0_31 = arith.constant 0 : index
    %75 = vector.load %arg11[%c0_30, %c0_31] : memref<64x1xbf16, #tpu.memory_space<vmem>>, vector<64x1xbf16>
    %cst_32 = arith.constant dense<0.000000e+00> : vector<128x1xf32>
    %76 = tpu.matmul %74, %75, %cst_32 {dimension_numbers = #tpu.dot_dimension_numbers<[1], [0], [0], [1], [0, 0, 1, 1], [], []>} : vector<128x64xbf16>, vector<64x1xbf16>, vector<128x1xf32> -> vector<128x1xf32>
    %c0_33 = arith.constant 0 : index
    %c0_34 = arith.constant 0 : index
    %77 = vector.load %arg12[%c0_33, %c0_34] : memref<1x1xf32, #tpu.memory_space<vmem>>, vector<1x1xf32>
    %78 = vector.broadcast %77 : vector<1x1xf32> to vector<128x1xf32>
    %79 = arith.addf %76, %78 : vector<128x1xf32>
    %cst_35 = arith.constant 0.000000e+00 : f32
    %80 = vector.broadcast %cst_35 : f32 to vector<128x1xf32>
    %81 = arith.maximumf %79, %80 : vector<128x1xf32>
    %82 = math.absf %79 : vector<128x1xf32>
    %cst_36 = arith.constant 0.000000e+00 : f32
    %83 = vector.broadcast %cst_36 : f32 to vector<128x1xf32>
    %84 = arith.subf %83, %82 : vector<128x1xf32>
    %85 = math.exp %84 : vector<128x1xf32>
    %86 = math.log1p %85 : vector<128x1xf32>
    %87 = arith.addf %81, %86 : vector<128x1xf32>
    %88 = vector.shape_cast %87 : vector<128x1xf32> to vector<1x128x1xf32>
    %cst_37 = arith.constant dense<0.000000e+00> : vector<1x1xf32>
    %89 = vector.multi_reduction <add>, %88, %cst_37 [1] : vector<1x128x1xf32> to vector<1x1xf32>
    %c1_i32_38 = arith.constant 1 : i32
    %90 = arith.muli %arg0, %c1_i32_38 : i32
    %91 = tpu.iota {dimensions = array<i32: 0>} : vector<1x1xi32>
    %92 = vector.broadcast %90 : i32 to vector<1x1xi32>
    %93 = arith.addi %92, %91 : vector<1x1xi32>
    %c2_i32 = arith.constant 2 : i32
    %94 = vector.broadcast %c2_i32 : i32 to vector<1x1xi32>
    %95 = arith.cmpi slt, %93, %94 : vector<1x1xi32>
    %cst_39 = arith.constant 1.000000e+00 : f32
    %96 = vector.broadcast %cst_39 : f32 to vector<1x1xf32>
    %97 = arith.subf %89, %96 : vector<1x1xf32>
    %98 = math.absf %97 : vector<1x1xf32>
    %cst_40 = arith.constant 0.000000e+00 : f32
    %99 = vector.broadcast %cst_40 : f32 to vector<1x1xf32>
    %100 = arith.select %95, %98, %99 : vector<1x1xi1>, vector<1x1xf32>
    %101 = vector.shape_cast %100 : vector<1x1xf32> to vector<1x1x1xf32>
    %cst_41 = arith.constant dense<0.000000e+00> : vector<1xf32>
    %102 = vector.multi_reduction <add>, %101, %cst_41 [1, 2] : vector<1x1x1xf32> to vector<1xf32>
    %103 = vector.shape_cast %102 : vector<1xf32> to vector<1x1x1xf32>
    %104 = vector.extract %103[0, 0, 0] : f32 from vector<1x1x1xf32>
    %cst_42 = arith.constant 5.000000e-01 : f32
    %105 = arith.mulf %104, %cst_42 : f32
    %106 = vector.broadcast %105 : f32 to vector<1x8x128xf32>
    %c0_43 = arith.constant 0 : index
    %c0_44 = arith.constant 0 : index
    %c0_45 = arith.constant 0 : index
    %107 = vector.load %arg13[%c0_43, %c0_44, %c0_45] : memref<1x8x128xf32, #tpu.memory_space<vmem>>, vector<1x8x128xf32>
    tpu.vector_store %arg13[%c0_43, %c0_44, %c0_45], %106 {strides = array<i32>} : memref<1x8x128xf32, #tpu.memory_space<vmem>>, vector<1x8x128xf32>,
    return
  }
  func.func @transform_0(%arg0: i32) -> (i32, i32) {
    %c0_i32 = arith.constant 0 : i32
    %c0_i32_0 = arith.constant 0 : i32
    %c0_i32_1 = arith.constant 0 : i32
    return %c0_i32, %c0_i32_0 : i32, i32
  }
  func.func @transform_1(%arg0: i32) -> (i32, i32) {
    %c0_i32 = arith.constant 0 : i32
    %c0_i32_0 = arith.constant 0 : i32
    return %arg0, %c0_i32 : i32, i32
  }
  func.func @transform_2(%arg0: i32) -> (i32, i32) {
    %c0_i32 = arith.constant 0 : i32
    %c0_i32_0 = arith.constant 0 : i32
    %c0_i32_1 = arith.constant 0 : i32
    return %c0_i32, %c0_i32_0 : i32, i32
  }
  func.func @transform_3(%arg0: i32) -> (i32, i32) {
    %c0_i32 = arith.constant 0 : i32
    %c0_i32_0 = arith.constant 0 : i32
    %c0_i32_1 = arith.constant 0 : i32
    return %c0_i32, %c0_i32_0 : i32, i32
  }
  func.func @transform_4(%arg0: i32) -> (i32, i32) {
    %c0_i32 = arith.constant 0 : i32
    %c0_i32_0 = arith.constant 0 : i32
    %c0_i32_1 = arith.constant 0 : i32
    return %c0_i32, %c0_i32_0 : i32, i32
  }
  func.func @transform_5(%arg0: i32) -> (i32, i32) {
    %c0_i32 = arith.constant 0 : i32
    %c0_i32_0 = arith.constant 0 : i32
    %c0_i32_1 = arith.constant 0 : i32
    return %c0_i32, %c0_i32_0 : i32, i32
  }
  func.func @transform_6(%arg0: i32) -> (i32, i32) {
    %c0_i32 = arith.constant 0 : i32
    %c0_i32_0 = arith.constant 0 : i32
    %c0_i32_1 = arith.constant 0 : i32
    return %c0_i32, %c0_i32_0 : i32, i32
  }
  func.func @transform_7(%arg0: i32) -> (i32, i32) {
    %c0_i32 = arith.constant 0 : i32
    %c0_i32_0 = arith.constant 0 : i32
    %c0_i32_1 = arith.constant 0 : i32
    return %c0_i32, %c0_i32_0 : i32, i32
  }
  func.func @transform_8(%arg0: i32) -> (i32, i32) {
    %c0_i32 = arith.constant 0 : i32
    %c0_i32_0 = arith.constant 0 : i32
    %c0_i32_1 = arith.constant 0 : i32
    return %c0_i32, %c0_i32_0 : i32, i32
  }
  func.func @transform_9(%arg0: i32) -> (i32, i32) {
    %c0_i32 = arith.constant 0 : i32
    %c0_i32_0 = arith.constant 0 : i32
    %c0_i32_1 = arith.constant 0 : i32
    return %c0_i32, %c0_i32_0 : i32, i32
  }
  func.func @transform_10(%arg0: i32) -> (i32, i32) {
    %c0_i32 = arith.constant 0 : i32
    %c0_i32_0 = arith.constant 0 : i32
    %c0_i32_1 = arith.constant 0 : i32
    return %c0_i32, %c0_i32_0 : i32, i32
  }
  func.func @transform_11(%arg0: i32) -> (i32, i32) {
    %c0_i32 = arith.constant 0 : i32
    %c0_i32_0 = arith.constant 0 : i32
    %c0_i32_1 = arith.constant 0 : i32
    return %c0_i32, %c0_i32_0 : i32, i32
  }
  func.func @transform_12(%arg0: i32) -> (i32, i32, i32) {
    %c0_i32 = arith.constant 0 : i32
    %c0_i32_0 = arith.constant 0 : i32
    %c0_i32_1 = arith.constant 0 : i32
    return %arg0, %c0_i32, %c0_i32_0 : i32, i32, i32
  }
}

</mosaic_0001>

<bundles_post_ra>
// kernel: diff_cluster_forward.1
= control target key start
LH: loop header
LB: loop body
LE: loop exit
PB: predicated region body
PF: predicated region fallthrough
CT: control target
= control target key end

     0   :  { %s3388_s23 = smov 0   ;;  %s4586_s0 = inlined_call_operand.vmem [shape: f32[2,64], index: 0, kind: input, shape index: {}]   ;;  %s4587_s1 = inlined_call_operand.vmem [shape: bf16[256,3], index: 1, kind: input, shape index: {}]   ;;  %s4588_s2 = inlined_call_operand.vmem [shape: bf16[64,64], index: 2, kind: input, shape index: {}]   ;;  %s4589_s3 = inlined_call_operand.vmem [shape: f32[1,64], index: 3, kind: input, shape index: {}]   ;;  %s4590_s4 = inlined_call_operand.vmem [shape: bf16[64,64], index: 4, kind: input, shape index: {}]   ;;  %s4591_s5 = inlined_call_operand.vmem [shape: f32[1,64], index: 5, kind: input, shape index: {}]   ;;  %s4592_s6 = inlined_call_operand.vmem [shape: bf16[64,64], index: 6, kind: input, shape index: {}]   ;;  %s4593_s7 = inlined_call_operand.vmem [shape: f32[1,64], index: 7, kind: input, shape index: {}]   ;;  %s4594_s8 = inlined_call_operand.vmem [shape: bf16[64,64], index: 8, kind: input, shape index: {}]   ;;  %s4595_s9 = inlined_call_operand.vmem [shape: f32[1,64], index: 9, kind: input, shape index: {}]   ;;  %s4596_s10 = inlined_call_operand.vmem [shape: bf16[64,1], index: 10, kind: input, shape index: {}]   ;;  %s4597_s11 = inlined_call_operand.<no memory space> [shape: f32[1,1], index: 11, kind: input, shape index: {}]   ;;  %s4598_s12 = inlined_call_operand.vmem [shape: f32[2,8,128], index: 12, kind: output, shape index: {}]  }
   0x1   :  { %v17_v0 = vstv %s4597_s11 }
   0x2   :  { %18 = vst [vmem:[#allocation2] sm:$0x1] %v17_v0 }
   0x3 LB: > { %s3394_s24 = sadd.s32 4294967295, %s3317_s23   ;;  %p2660_p0 = scmp.ge.s32.totalorder %s3317_s23, 1  ;;  %s3317_s23 = sphi %s3388_s23, %s24_s23  }
   0x4   : > { %p365_p1 = scmp.lt.s32.totalorder %s3317_s23, 3 }
   0x6   : > { %p366_p2 = pnand %p2660_p0, %p365_p1 }
   0x7   : > { %v2971_v1 = vld [vmem:[%s4588_s2] sm:$0xff] (!%p366_p2)   ;;  %s2661_s11 = sshll.u32 (!%p366_p2), %s3394_s24, 4  ;;  %v2972_v2 = vld [vmem:[%s4588_s2 + $0x8] sm:$0xff] (!%p366_p2)   ;;  %v2973_v3 = vld [vmem:[%s4588_s2 + $0x10] sm:$0xff] (!%p366_p2)   ;;  %s419_s16 = scalar_lea.vmem (!%p366_p2), %s4586_s0, %s3394_s24  ;;  %vm457_vm0 = vcmask (!%p366_p2), 23552   ;;  %vm537_vm1 = vcmask (!%p366_p2), 523264  }
   0x8   : > { %369 = sbr.rel (%p366_p2) target bundleno = 1461 (0x5b5), region = 68  ;;  %p407_p3 = scmp.lt.s32.totalorder (!%p366_p2), %s2661_s11, 31  ;;  %2832 = vmatprep.subr.bf16.mxu0 (!%p366_p2), %v2971_v1  ;;  %2952 = vmatprep.subr.bf16.mxu1 (!%p366_p2), %v2971_v1  ;;  %v2974_v7 = vld [vmem:[%s4588_s2 + $0x18] sm:$0xff] (!%p366_p2)   ;;  %v3423_v8 = vld [vmem:[%s419_s16] ss:$0 sm:$0xff] (!%p366_p2) }
   0x9   : > { %2833 = vmatpush3.bf16.msra.mxu0 (!%p366_p2), %v2971_v1  ;;  %2956 = vmatpush3.bf16.msra.mxu1 (!%p366_p2), %v2971_v1  ;;  %p412_p4 = scmp.lt.s32.totalorder (!%p366_p2), %s3394_s24, 1 }
   0xa   : > { %2834 = vmatprep.subr.bf16.mxu0 (!%p366_p2), %v2972_v2  ;;  %2953 = vmatprep.subr.bf16.mxu1 (!%p366_p2), %v2972_v2 }
   0xd   : > { %2835 = vmatpush3.bf16.msra.mxu0 (!%p366_p2), %v2972_v2  ;;  %2957 = vmatpush3.bf16.msra.mxu1 (!%p366_p2), %v2972_v2 }
   0xe   : > { %2836 = vmatprep.subr.bf16.mxu0 (!%p366_p2), %v2973_v3  ;;  %2954 = vmatprep.subr.bf16.mxu1 (!%p366_p2), %v2973_v3 }
   0xf   : > { %s4708_s11 = smov (!%p407_p3, %s2661_s11), 31 }
  0x10   : > { %s2662_s13 = sshll.u32 %s4708_s11, 2 }
  0x11   : > { %s3415_s19 = scalar_lea.vmem %s4587_s1, %s2662_s13  ;;  %2837 = vmatpush3.bf16.msra.mxu0 %v2973_v3  ;;  %2958 = vmatpush3.bf16.msra.mxu1 %v2973_v3 }
  0x12   : > { %v2734_v4 = vld [vmem:[%s3415_s19] sm:$0xff]   ;;  %v2765_v6 = vld [vmem:[%s3415_s19 + $0x8] sm:$0xff]   ;;  %v2766_v18 = vld [vmem:[%s3415_s19 + $0x10] sm:$0xff]   ;;  %2838 = vmatprep.subr.bf16.mxu0 %v2974_v7  ;;  %2955 = vmatprep.subr.bf16.mxu1 %v2974_v7 }
  0x13   : > { %v2768_v5 = vld [vmem:[%s3415_s19 + $0x20] sm:$0xff]   ;;  %v2735_v9 = vunpack.c.l.bf16 %v2734_v4  ;;  %v2736_v10 = vunpack.c.h.bf16 %v2734_v4  ;;  %v2769_v13 = vld [vmem:[%s3415_s19 + $0x28] sm:$0xff]   ;;  %v2739_v14 = vunpack.c.l.bf16 %v2765_v6  ;;  %v2740_v15 = vunpack.c.h.bf16 %v2765_v6  ;;  %v2770_v23 = vld [vmem:[%s3415_s19 + $0x30] sm:$0xff]  }
  0x14   : > { %v2751_v11 = vunpack.c.l.bf16 %v2768_v5  ;;  %v2752_v12 = vunpack.c.h.bf16 %v2768_v5  ;;  %v2755_v16 = vunpack.c.l.bf16 %v2769_v13  ;;  %v2756_v17 = vunpack.c.h.bf16 %v2769_v13  ;;  %v2767_v28 = vld [vmem:[%s3415_s19 + $0x18] sm:$0xff]   ;;  %v2975_v6 = vld [vmem:[%s4590_s4] sm:$0xff]  }
  0x15   : > { %v458_v19 = vsel %vm457_vm0, %v2735_v9, 0.0  ;;  %v459_v20 = vsel %vm457_vm0, %v2736_v10, 0.0  ;;  %v460_v27 = vsel %vm457_vm0, %v2739_v14, 0.0  ;;  %v461_v30 = vsel %vm457_vm0, %v2740_v15, 0.0  ;;  %v2771_v41 = vld [vmem:[%s3415_s19 + $0x38] sm:$0xff]   ;;  %2839 = vmatpush3.bf16.msra.mxu0 %v2974_v7  ;;  %2959 = vmatpush3.bf16.msra.mxu1 %v2974_v7  ;;  %v2976_v7 = vld [vmem:[%s4590_s4 + $0x8] sm:$0xff]  }
  0x16   : > { %v466_v21 = vsel %vm457_vm0, %v2751_v11, 0.0  ;;  %v467_v22 = vsel %vm457_vm0, %v2752_v12, 0.0  ;;  %v474_v24 = vadd.f32 %v3423_v8, %v458_v19  ;;  %v475_v25 = vadd.f32 %v3423_v8, %v459_v20  ;;  %2856 = vmatprep.subr.bf16.mxu1 %v2975_v6  ;;  %v2978_v9 = vld [vmem:[%s4590_s4 + $0x18] sm:$0xff]   ;;  %v3509_v10 = vld [vmem:[%s4589_s3] ss:$0 sm:$0xff] }
  0x17   : > { %v482_v26 = vadd.f32 %v3423_v8, %v466_v21  ;;  %v483_v29 = vadd.f32 %v3423_v8, %v467_v22  ;;  %v476_v31 = vadd.f32 %v3423_v8, %v460_v27  ;;  %v468_v32 = vsel %vm457_vm0, %v2755_v16, 0.0 }
  0x18   : > { %v3441_v33 = vpack.c.bf16 %v475_v25, %v474_v24  ;;  %v477_v34 = vadd.f32 %v3423_v8, %v461_v30  ;;  %v469_v35 = vsel %vm457_vm0, %v2756_v17, 0.0  ;;  %v484_v36 = vadd.f32 %v3423_v8, %v468_v32 }
  0x19   : > { %v3446_v37 = vpack.c.bf16 %v483_v29, %v482_v26  ;;  %v485_v38 = vadd.f32 %v3423_v8, %v469_v35  ;;  %v2743_v39 = vunpack.c.l.bf16 %v2766_v18  ;;  %v2744_v40 = vunpack.c.h.bf16 %v2766_v18 }
  0x1a   : > { %v3450_v42 = vpack.c.bf16 %v477_v34, %v476_v31  ;;  %v2759_v43 = vunpack.c.l.bf16 %v2770_v23  ;;  %v2760_v44 = vunpack.c.h.bf16 %v2770_v23  ;;  %v2747_v45 = vunpack.c.l.bf16 %v2767_v28  ;;  %2840 = vmatprep.mubr.msk.bf16.mxu0 %vm537_vm1, %v3441_v33 }
  0x1b   : > { %2848 = vmatprep.mubr.msk.bf16.mxu1 %vm537_vm1, %v3446_v37  ;;  %v3456_v46 = vpack.c.bf16 %v485_v38, %v484_v36  ;;  %v462_v47 = vsel %vm457_vm0, %v2743_v39, 0.0  ;;  %v463_v48 = vsel %vm457_vm0, %v2744_v40, 0.0  ;;  %v2748_v49 = vunpack.c.h.bf16 %v2767_v28 }
  0x1c   : > { %v478_v50 = vadd.f32 %v3423_v8, %v462_v47  ;;  %v479_v51 = vadd.f32 %v3423_v8, %v463_v48  ;;  %v470_v52 = vsel %vm457_vm0, %v2759_v43, 0.0  ;;  %v471_v53 = vsel %vm457_vm0, %v2760_v44, 0.0  ;;  %2841 = vmatmul.mubr.msk.bf16.vlgmr.msra.gmra.mrb[0].mxu0 %vm537_vm1, %v3450_v42 }
  0x1d   : > { %2849 = vmatmul.mubr.msk.bf16.vlgmr.msra.gmra.mrb[0].mxu1 %vm537_vm1, %v3456_v46  ;;  %v486_v54 = vadd.f32 %v3423_v8, %v470_v52  ;;  %v487_v55 = vadd.f32 %v3423_v8, %v471_v53  ;;  %v464_v56 = vsel %vm457_vm0, %v2747_v45, 0.0  ;;  %v465_v57 = vsel %vm457_vm0, %v2748_v49, 0.0 }
  0x1e   : > { %v3472_v58 = vpack.c.bf16 %v479_v51, %v478_v50  ;;  %v480_v59 = vadd.f32 %v3423_v8, %v464_v56  ;;  %v481_v60 = vadd.f32 %v3423_v8, %v465_v57  ;;  %v2763_v61 = vunpack.c.l.bf16 %v2771_v41  ;;  %2857 = vmatpush3.bf16.msra.mxu1 %v2975_v6 }
  0x1f   : > { %v3476_v62 = vpack.c.bf16 %v487_v55, %v486_v54  ;;  %v2764_v63 = vunpack.c.h.bf16 %v2771_v41  ;;  %2858 = vmatprep.subr.bf16.mxu1 %v2976_v7 }
  0x20   : > { %2844 = vmatprep.mubr.msk.bf16.mxu0 %vm537_vm1, %v3472_v58  ;;  %v472_v0 = vsel %vm457_vm0, %v2763_v61, 0.0  ;;  %v3483_v1 = vpack.c.bf16 %v481_v60, %v480_v59 }
  0x21   : > { %2852 = vmatprep.mubr.msk.bf16.mxu1 %vm537_vm1, %v3476_v62  ;;  %v473_v2 = vsel %vm457_vm0, %v2764_v63, 0.0  ;;  %v488_v3 = vadd.f32 %v3423_v8, %v472_v0 }
  0x22   : > { %v489_v4 = vadd.f32 %v3423_v8, %v473_v2  ;;  %2859 = vmatpush3.bf16.msra.mxu1 %v2976_v7  ;;  %v2977_v8 = vld [vmem:[%s4590_s4 + $0x10] sm:$0xff]  }
  0x23   : > { %2860 = vmatprep.subr.bf16.mxu1 %v2977_v8 }
  0x24   : > { %v3488_v5 = vpack.c.bf16 %v489_v4, %v488_v3  ;;  %2845 = vmatmul.mubr.msk.bf16.gmra.mrb[4].mxu0 %vm537_vm1, %v3483_v1 }
  0x26   : > { %2853 = vmatmul.mubr.msk.bf16.gmra.mrb[4].mxu1 %vm537_vm1, %v3488_v5 }
  0x27   : > { %2861 = vmatpush3.bf16.msra.mxu1 %v2977_v8 }
  0x28   : > { %2862 = vmatprep.subr.bf16.mxu1 %v2978_v9 }
  0x2b   : > { %2863 = vmatpush3.bf16.msra.mxu1 %v2978_v9 }
  0xef   : > { %v2842_v11 = vpop.f32.mrb[0].mxu0 }
  0xf0   : > { %v2850_v12 = vpop.f32.mrb[0].mxu1  ;;  %v3512_v13 = vadd.f32 %v2842_v11, %v3509_v10  ;;  %v596_v15 = vpop.f32.mrb[1].mxu0 }
  0xf1   : > { %v3515_v14 = vadd.f32 %v2850_v12, %v3509_v10  ;;  %v628_v16 = vpop.f32.mrb[1].mxu1  ;;  %v3518_v17 = vadd.f32 %v3509_v10, %v596_v15  ;;  %v2843_v19 = vpop.f32.mrb[2].mxu0 }
  0xf2   : > { %v3521_v18 = vadd.f32 %v3509_v10, %v628_v16  ;;  %v2851_v20 = vpop.f32.mrb[2].mxu1  ;;  %v677_v21 = vand.u32 2147483647, %v3512_v13  ;;  %v3528_v27 = vadd.f32 %v2843_v19, %v3509_v10  ;;  %v599_v29 = vpop.f32.mrb[3].mxu0  ;;  %v661_v11 = vmax.f32 %v3512_v13, 0.0 }
  0xf3   : > { %v685_v22 = vand.u32 2147483647, %v3515_v14  ;;  %v675_v23 = vand.u32 2147483647, %v3518_v17  ;;  %v3531_v28 = vadd.f32 %v2851_v20, %v3509_v10  ;;  %v631_v30 = vpop.f32.mrb[3].mxu1  ;;  %v3534_v34 = vadd.f32 %v3509_v10, %v599_v29 }
  0xf4   : > { %v683_v24 = vand.u32 2147483647, %v3521_v18  ;;  %v693_v25 = vsub.f32 0.0, %v677_v21  ;;  %v3537_v35 = vadd.f32 %v3509_v10, %v631_v30  ;;  %v678_v41 = vand.u32 2147483647, %v3528_v27 }
  0xf5   : > { %v701_v26 = vsub.f32 0.0, %v685_v22  ;;  %v691_v31 = vsub.f32 0.0, %v675_v23  ;;  %v686_v43 = vand.u32 2147483647, %v3531_v28  ;;  %v676_v44 = vand.u32 2147483647, %v3534_v34 }
  0xf6   : > { %v699_v32 = vsub.f32 0.0, %v683_v24  ;;  %v711_v36 = vmul.f32 1.442695, %v693_v25  ;;  %v694_v47 = vsub.f32 0.0, %v678_v41  ;;  %v684_v48 = vand.u32 2147483647, %v3537_v35 }
  0xf7   : > { %v727_v38 = vmul.f32 1.442695, %v701_v26  ;;  %v707_v39 = vmul.f32 1.442695, %v691_v31  ;;  %v2846_v45 = vpop.f32.mrb[4].mxu0  ;;  %v702_v51 = vsub.f32 0.0, %v686_v43 }
  0xf8   : > { %v723_v40 = vmul.f32 1.442695, %v699_v32  ;;  %2991 = vpow2.f32 %v711_v36  ;;  %v612_v50 = vpop.f32.mrb[5].mxu0  ;;  %v692_v52 = vsub.f32 0.0, %v676_v44  ;;  %v3544_v53 = vadd.f32 %v2846_v45, %v3509_v10 }
  0xf9   : > { %2993 = vpow2.f32 %v727_v38  ;;  %v2854_v49 = vpop.f32.mrb[4].mxu1  ;;  %v2847_v55 = vpop.f32.mrb[6].mxu0  ;;  %v713_v56 = vmul.f32 1.442695, %v694_v47  ;;  %v700_v57 = vsub.f32 0.0, %v684_v48  ;;  %v3554_v7 = vadd.f32 %v3509_v10, %v612_v50 }
  0xfa   : > { %2995 = vpow2.f32 %v707_v39  ;;  %v644_v54 = vpop.f32.mrb[5].mxu1  ;;  %v3547_v59 = vadd.f32 %v2854_v49, %v3509_v10  ;;  %v615_v61 = vpop.f32.mrb[7].mxu0  ;;  %v729_v63 = vmul.f32 1.442695, %v702_v51  ;;  %v709_v0 = vmul.f32 1.442695, %v692_v52 }
  0xfb   : > { %2997 = vpow2.f32 %v723_v40  ;;  %v2855_v60 = vpop.f32.mrb[6].mxu1  ;;  %v725_v3 = vmul.f32 1.442695, %v700_v57  ;;  %v681_v4 = vand.u32 2147483647, %v3544_v53  ;;  %v3573_v36 = vadd.f32 %v3509_v10, %v644_v54 }
  0xfc   : > { %v3549_v2 = vpop.f32.mrb[7].mxu1  ;;  %2999 = vpow2.f32 %v713_v56  ;;  %v689_v6 = vand.u32 2147483647, %v3547_v59  ;;  %v679_v15 = vand.u32 2147483647, %v3554_v7  ;;  %v3576_v40 = vadd.f32 %v2847_v55, %v3509_v10 }
  0xfd   : > { %3001 = vpow2.f32 %v729_v63  ;;  %v697_v8 = vsub.f32 0.0, %v681_v4  ;;  %v3586_v50 = vadd.f32 %v2855_v60, %v3509_v10  ;;  %v687_v55 = vand.u32 2147483647, %v3573_v36 }
  0xfe   : > { %3003 = vpow2.f32 %v709_v0  ;;  %v705_v12 = vsub.f32 0.0, %v689_v6  ;;  %v695_v39 = vsub.f32 0.0, %v679_v15  ;;  %v3597_v63 = vadd.f32 %v3509_v10, %v615_v61 }
  0xff   : > { %3005 = vpow2.f32 %v725_v3  ;;  %v719_v29 = vmul.f32 1.442695, %v697_v8 }
 0x100   : > { %v735_v38 = vmul.f32 1.442695, %v705_v12  ;;  %v3593_v56 = vmul.f32 1.442695, %v695_v39 }
 0x102   : > { %v2992_v9 = vpop.eup %2991 }
 0x103   : > { %v3558_v16 = vpop.eup %2993  ;;  %v757_v19 = vadd.f32 1.0, %v2992_v9  ;;  %v760_v43 = vmul.f32 -0.5, %v2992_v9  ;;  %v763_v48 = vand.u32 2147483647, %v2992_v9 }
 0x104   : > { %v3563_v23 = vpop.eup %2995  ;;  %v829_v24 = vadd.f32 1.0, %v3558_v16  ;;  %v832_v49 = vmul.f32 -0.5, %v3558_v16  ;;  %v835_v52 = vand.u32 2147483647, %v3558_v16 }
 0x105   : > { %v3568_v30 = vpop.eup %2997  ;;  %3007 = vlog2.f32 %v757_v19  ;;  %v739_v31 = vadd.f32 1.0, %v3563_v23  ;;  %v761_v60 = vadd.f32 1.0, %v760_v43  ;;  %v742_v3 = vmul.f32 -0.5, %v3563_v23 }
 0x106   : > { %3009 = vlog2.f32 %v829_v24  ;;  %v3578_v41 = vpop.eup %2999  ;;  %v811_v44 = vadd.f32 1.0, %v3568_v30  ;;  %vm3601_vm2 = vcmp.lt.f32.partialorder %v763_v48, 0.0004427343  ;;  %v833_v8 = vadd.f32 1.0, %v832_v49 }
 0x107   : > { %3011 = vlog2.f32 %v739_v31  ;;  %v3582_v47 = vpop.eup %3001  ;;  %v766_v54 = vadd.f32 1.0, %v3578_v41  ;;  %v814_v12 = vmul.f32 -0.5, %v3568_v30  ;;  %vm3607_vm3 = vcmp.lt.f32.partialorder %v835_v52, 0.0004427343 }
 0x108   : > { %3013 = vpow2.f32 %v719_v29  ;;  %v3588_v51 = vpop.eup %3003  ;;  %v838_v4 = vadd.f32 1.0, %v3582_v47  ;;  %v745_v61 = vand.u32 2147483647, %v3563_v23  ;;  %v769_v24 = vmul.f32 -0.5, %v3578_v41 }
 0x109   : > { %3015 = vlog2.f32 %v811_v44  ;;  %v3006_v0 = vpop.eup %3005  ;;  %v748_v15 = vadd.f32 1.0, %v3588_v51  ;;  %v841_v29 = vmul.f32 -0.5, %v3582_v47  ;;  %v751_v31 = vmul.f32 -0.5, %v3588_v51 }
 0x10a   : > { %3017 = vpow2.f32 %v735_v38  ;;  %v820_v38 = vadd.f32 1.0, %v3006_v0  ;;  %v762_v43 = vmul.f32 %v2992_v9, %v761_v60  ;;  %v743_v44 = vadd.f32 1.0, %v742_v3 }
 0x10b   : > { %3019 = vlog2.f32 %v766_v54  ;;  %v817_v48 = vand.u32 2147483647, %v3568_v30  ;;  %v823_v49 = vmul.f32 -0.5, %v3006_v0  ;;  %v815_v45 = vadd.f32 1.0, %v814_v12 }
 0x10c   : > { %3021 = vlog2.f32 %v838_v4  ;;  %v772_v22 = vand.u32 2147483647, %v3578_v41  ;;  %v834_v21 = vmul.f32 %v3558_v16, %v833_v8  ;;  %v844_v26 = vand.u32 2147483647, %v3582_v47 }
 0x10d   : > { %3023 = vlog2.f32 %v748_v15  ;;  %v770_v15 = vadd.f32 1.0, %v769_v24  ;;  %vm3621_vm4 = vcmp.lt.f32.partialorder %v745_v61, 0.0004427343  ;;  %v842_v60 = vadd.f32 1.0, %v841_v29 }
 0x10e   : > { %3025 = vlog2.f32 %v820_v38  ;;  %v752_v3 = vadd.f32 1.0, %v751_v31  ;;  %v754_v12 = vand.u32 2147483647, %v3588_v51  ;;  %v744_v38 = vmul.f32 %v3563_v23, %v743_v44 }
 0x10f   : > { %v3008_v39 = vpop.eup %3007  ;;  %vm3627_vm5 = vcmp.lt.f32.partialorder %v817_v48, 0.0004427343  ;;  %v824_v16 = vadd.f32 1.0, %v823_v49  ;;  %v826_v8 = vand.u32 2147483647, %v3006_v0  ;;  %v816_v29 = vmul.f32 %v3568_v30, %v815_v45 }
 0x110   : > { %v3010_v52 = vpop.eup %3009  ;;  %v759_v54 = vmul.f32 0.6931472, %v3008_v39  ;;  %vm3636_vm6 = vcmp.lt.f32.partialorder %v772_v22, 0.0004427343  ;;  %v771_v48 = vmul.f32 %v3578_v41, %v770_v15  ;;  %vm3643_vm7 = vcmp.lt.f32.partialorder %v844_v26, 0.0004427343 }
 0x111   : > { %v3012_v32 = vpop.eup %3011  ;;  %v831_v4 = vmul.f32 0.6931472, %v3010_v52  ;;  %v753_v30 = vmul.f32 %v3588_v51, %v752_v3  ;;  %vm3649_vm8 = vcmp.lt.f32.partialorder %v754_v12, 0.0004427343  ;;  %v825_v19 = vmul.f32 %v3006_v0, %v824_v16 }
 0x112   : > { %v3619_v57 = vpop.eup %3013  ;;  %v765_v61 = vsel %vm3601_vm2, %v762_v43, %v759_v54  ;;  %v741_v25 = vmul.f32 0.6931472, %v3012_v32  ;;  %v843_v32 = vmul.f32 %v3582_v47, %v842_v60  ;;  %vm3655_vm9 = vcmp.lt.f32.partialorder %v826_v8, 0.0004427343 }
 0x113   : > { %v3016_v39 = vpop.eup %3015  ;;  %v837_v23 = vsel %vm3607_vm3, %v834_v21, %v831_v4  ;;  %v885_v21 = vadd.f32 %v765_v61, %v661_v11  ;;  %v4615_v47 = vmax.f32 %v3515_v14, 0.0  ;;  %v4616_v54 = vmax.f32 %v3528_v27, 0.0 }
 0x114   : > { %v3631_v24 = vpop.eup %3017  ;;  %v813_v44 = vmul.f32 0.6931472, %v3016_v39  ;;  %v747_v43 = vsel %vm3621_vm4, %v744_v38, %v741_v25  ;;  %3027 = vpow2.f32 %v3593_v56  ;;  %v4617_v25 = vand.u32 2147483647, %v3576_v40 }
 0x115   : > { %v3020_v20 = vpop.eup %3019  ;;  %v3663_v51 = vadd.f32 %v837_v23, %v4615_v47  ;;  %v690_v3 = vand.u32 2147483647, %v3586_v50  ;;  %v4618_v39 = vmax.f32 %v3531_v28, 0.0  ;;  %v4619_v56 = vmax.f32 %v3518_v17, 0.0 }
 0x116   : > { %v768_v6 = vmul.f32 0.6931472, %v3020_v20  ;;  %v3022_v45 = vpop.eup %3021  ;;  %v703_v20 = vsub.f32 0.0, %v687_v55  ;;  %v819_v0 = vsel %vm3627_vm5, %v816_v29, %v813_v44  ;;  %v698_v9 = vsub.f32 0.0, %v4617_v25 }
 0x117   : > { %v3024_v26 = vpop.eup %3023  ;;  %v840_v11 = vmul.f32 0.6931472, %v3022_v45  ;;  %v883_v16 = vadd.f32 %v747_v43, %v4619_v56  ;;  %v4620_v8 = vmax.f32 %v3534_v34, 0.0  ;;  %v706_v31 = vsub.f32 0.0, %v690_v3 }
 0x118   : > { %v774_v13 = vsel %vm3636_vm6, %v771_v48, %v768_v6  ;;  %v750_v15 = vmul.f32 0.6931472, %v3024_v26  ;;  %v3026_v55 = vpop.eup %3025  ;;  %v731_v60 = vmul.f32 1.442695, %v703_v20  ;;  %v721_v29 = vmul.f32 1.442695, %v698_v9 }
 0x119   : > { %v886_v4 = vadd.f32 %v774_v13, %v4616_v54  ;;  %v846_v14 = vsel %vm3643_vm7, %v843_v32, %v840_v11  ;;  %v822_v52 = vmul.f32 0.6931472, %v3026_v55  ;;  %v4621_v23 = vmax.f32 %v3521_v18, 0.0 }
 0x11a   : > { %v3681_v38 = vadd.f32 %v846_v14, %v4618_v39  ;;  %v756_v27 = vsel %vm3649_vm8, %v753_v30, %v750_v15  ;;  %v4622_v6 = vmax.f32 %v3537_v35, 0.0  ;;  %3029 = vpow2.f32 %v721_v29 }
 0x11b   : > { %v900_v12 = vpack.c.bf16 %v886_v4, %v885_v21  ;;  %v884_v61 = vadd.f32 %v756_v27, %v4620_v8  ;;  %v3691_v44 = vadd.f32 %v819_v0, %v4621_v23  ;;  %v828_v48 = vsel %vm3655_vm9, %v825_v19, %v822_v52 }
 0x11c   : > { %v904_v28 = vpack.c.bf16 %v3681_v38, %v3663_v51  ;;  %v3699_v17 = vadd.f32 %v828_v48, %v4622_v6  ;;  %v737_v34 = vmul.f32 1.442695, %v706_v31  ;;  %v793_v32 = vadd.f32 1.0, %v3619_v57  ;;  %v2981_v51 = vld [vmem:[%s4592_s6 + $0x10] sm:$0xff]   ;;  %v2982_v38 = vld [vmem:[%s4592_s6 + $0x18] sm:$0xff]  }
 0x11d   : > { %v899_v49 = vpack.c.bf16 %v884_v61, %v883_v16  ;;  %3031 = vpow2.f32 %v731_v60  ;;  %v680_v18 = vand.u32 2147483647, %v3597_v63  ;;  %v3705_v30 = vadd.f32 %v3509_v10, %v3549_v2 }
 0x11e   : > { %v903_v22 = vpack.c.bf16 %v3699_v17, %v3691_v44  ;;  %v865_v45 = vadd.f32 1.0, %v3631_v24  ;;  %3033 = vpow2.f32 %v737_v34  ;;  %v3713_v19 = vpop.eup %3027  ;;  %v868_v26 = vmul.f32 -0.5, %v3631_v24  ;;  %v2980_v44 = vld [vmem:[%s4592_s6 + $0x8] sm:$0xff]  }
 0x11f   : > { %2864 = vmatprep.mubr.msk.bf16.mxu1 %vm537_vm1, %v899_v49  ;;  %v696_v35 = vsub.f32 0.0, %v680_v18  ;;  %v688_v21 = vand.u32 2147483647, %v3705_v30  ;;  %3035 = vlog2.f32 %v793_v32  ;;  %v775_v47 = vadd.f32 1.0, %v3713_v19 }
 0x120   : > { %2865 = vmatmul.mubr.msk.bf16.vlgmr.msra.gmra.mrb[8].mxu1 %vm537_vm1, %v900_v12  ;;  %3037 = vlog2.f32 %v865_v45  ;;  %v796_v0 = vmul.f32 -0.5, %v3619_v57  ;;  %v869_v4 = vadd.f32 1.0, %v868_v26  ;;  %v871_v25 = vand.u32 2147483647, %v3631_v24 }
 0x121   : > { %v717_v41 = vmul.f32 1.442695, %v696_v35  ;;  %v704_v10 = vsub.f32 0.0, %v688_v21  ;;  %v799_v39 = vand.u32 2147483647, %v3619_v57  ;;  %v665_v29 = vmax.f32 %v3544_v53, 0.0 }
 0x122   : > { %v797_v3 = vadd.f32 1.0, %v796_v0  ;;  %v870_v27 = vmul.f32 %v3631_v24, %v869_v4  ;;  %v673_v31 = vmax.f32 %v3547_v59, 0.0  ;;  %vm3731_vm10 = vcmp.lt.f32.partialorder %v871_v25, 0.0004427343 }
 0x123   : > { %3039 = vpow2.f32 %v717_v41  ;;  %v733_v2 = vmul.f32 1.442695, %v704_v10  ;;  %vm3736_vm11 = vcmp.lt.f32.partialorder %v799_v39, 0.0004427343  ;;  %v778_v32 = vmul.f32 -0.5, %v3713_v19 }
 0x124   : > { %v3030_v20 = vpop.eup %3029  ;;  %v798_v49 = vmul.f32 %v3619_v57, %v797_v3  ;;  %v666_v53 = vmax.f32 %v3576_v40, 0.0  ;;  %v674_v40 = vmax.f32 %v3586_v50, 0.0 }
 0x125   : > { %3041 = vpow2.f32 %v733_v2  ;;  %v802_v13 = vadd.f32 1.0, %v3030_v20  ;;  %v805_v14 = vmul.f32 -0.5, %v3030_v20  ;;  %v808_v24 = vand.u32 2147483647, %v3030_v20 }
 0x126   : > { %v779_v4 = vadd.f32 1.0, %v778_v32 }
 0x127   : > { %v3717_v43 = vpop.eup %3031  ;;  %3043 = vlog2.f32 %v802_v13  ;;  %v806_v16 = vadd.f32 1.0, %v805_v14  ;;  %vm809_vm12 = vcmp.lt.f32.partialorder %v808_v24, 0.0004427343 }
 0x128   : > { %v3034_v11 = vpop.eup %3033  ;;  %3045 = vlog2.f32 %v775_v47  ;;  %v847_v15 = vadd.f32 1.0, %v3717_v43  ;;  %v850_v35 = vmul.f32 -0.5, %v3717_v43  ;;  %v853_v3 = vand.u32 2147483647, %v3717_v43 }
 0x129   : > { %v874_v54 = vadd.f32 1.0, %v3034_v11  ;;  %v3036_v55 = vpop.eup %3035  ;;  %v877_v9 = vmul.f32 -0.5, %v3034_v11  ;;  %v880_v6 = vand.u32 2147483647, %v3034_v11  ;;  %v807_v21 = vmul.f32 %v3030_v20, %v806_v16 }
 0x12a   : > { %v3038_v60 = vpop.eup %3037  ;;  %v795_v52 = vmul.f32 0.6931472, %v3036_v55  ;;  %v851_v14 = vadd.f32 1.0, %v850_v35  ;;  %vm3763_vm15 = vcmp.lt.f32.partialorder %v853_v3, 0.0004427343 }
 0x12b   : > { %3047 = vlog2.f32 %v874_v54  ;;  %v867_v56 = vmul.f32 0.6931472, %v3038_v60  ;;  %v878_v48 = vadd.f32 1.0, %v877_v9  ;;  %vm3750_vm13 = vcmp.lt.f32.partialorder %v880_v6, 0.0004427343 }
 0x12c   : > { %3049 = vlog2.f32 %v847_v15  ;;  %v801_v45 = vsel %vm3736_vm11, %v798_v49, %v795_v52 }
 0x12d   : > { %v3722_v12 = vpop.eup %3039  ;;  %v873_v57 = vsel %vm3731_vm10, %v870_v27, %v867_v56  ;;  %v879_v2 = vmul.f32 %v3034_v11, %v878_v48  ;;  %v889_v54 = vadd.f32 %v801_v45, %v665_v29  ;;  %v781_v11 = vand.u32 2147483647, %v3713_v19 }
 0x12e   : > { %v784_v8 = vadd.f32 1.0, %v3722_v12  ;;  %v787_v26 = vmul.f32 -0.5, %v3722_v12  ;;  %v897_v55 = vadd.f32 %v873_v57, %v673_v31  ;;  %v790_v56 = vand.u32 2147483647, %v3722_v12 }
 0x12f   : > { %v3727_v61 = vpop.eup %3041  ;;  %vm782_vm14 = vcmp.lt.f32.partialorder %v781_v11, 0.0004427343  ;;  %v852_v48 = vmul.f32 %v3717_v43, %v851_v14 }
 0x130   : > { %3051 = vlog2.f32 %v784_v8  ;;  %v856_v59 = vadd.f32 1.0, %v3727_v61  ;;  %v859_v0 = vmul.f32 -0.5, %v3727_v61  ;;  %v788_v39 = vadd.f32 1.0, %v787_v26 }
 0x131   : > { %v3044_v18 = vpop.eup %3043  ;;  %v780_v8 = vmul.f32 %v3713_v19, %v779_v4  ;;  %v862_v29 = vand.u32 2147483647, %v3727_v61  ;;  %v664_v19 = vmax.f32 %v3597_v63, 0.0  ;;  %vm791_vm0 = vcmp.lt.f32.partialorder %v790_v56, 0.0004427343 }
 0x132   : > { %v3046_v41 = vpop.eup %3045  ;;  %v804_v10 = vmul.f32 0.6931472, %v3044_v18  ;;  %3053 = vlog2.f32 %v856_v59  ;;  %v860_v16 = vadd.f32 1.0, %v859_v0  ;;  %v789_v32 = vmul.f32 %v3722_v12, %v788_v39 }
 0x133   : > { %v777_v9 = vmul.f32 0.6931472, %v3046_v41  ;;  %vm863_vm2 = vcmp.lt.f32.partialorder %v862_v29, 0.0004427343  ;;  %v671_v41 = vmax.f32 %v3573_v36, 0.0  ;;  %v672_v12 = vmax.f32 %v3705_v30, 0.0 }
 0x134   : > { %v810_v15 = vsel %vm809_vm12, %v807_v21, %v804_v10  ;;  %v861_v59 = vmul.f32 %v3727_v61, %v860_v16  ;;  %v2979_v36 = vld [vmem:[%s4592_s6] sm:$0xff]   ;;  %v1315_v39 = vlaneseq }
 0x135   : > { %v3048_v47 = vpop.eup %3047  ;;  %v890_v60 = vadd.f32 %v810_v15, %v666_v53  ;;  %v783_v24 = vsel %vm782_vm14, %v780_v8, %v777_v9  ;;  %v663_v53 = vmax.f32 %v3554_v7, 0.0  ;;  %2880 = vmatprep.subr.bf16.mxu0 %v2979_v36 }
 0x136   : > { %v876_v20 = vmul.f32 0.6931472, %v3048_v47  ;;  %v3050_v25 = vpop.eup %3049  ;;  %2881 = vmatpush3.bf16.msra.mxu0 %v2979_v36  ;;  %v1316_v29 = vand.u32 127, %v1315_v39 }
 0x137   : > { %v902_v27 = vpack.c.bf16 %v890_v60, %v889_v54  ;;  %v849_v23 = vmul.f32 0.6931472, %v3050_v25  ;;  %v887_v43 = vadd.f32 %v783_v24, %v663_v53  ;;  %2882 = vmatprep.subr.bf16.mxu0 %v2980_v44  ;;  %v3820_v24 = vshrl.u32 %v1315_v39, 7 }
 0x138   : > { %v882_v50 = vsel %vm3750_vm13, %v879_v2, %v876_v20  ;;  %vm1317_vm3 = vcmp.lt.s32.totalorder %v1316_v29, 3 }
 0x139   : > { %v898_v52 = vadd.f32 %v882_v50, %v674_v40  ;;  %v855_v57 = vsel %vm3763_vm15, %v852_v48, %v849_v23  ;;  %vm1320_vm4 = vmpackc.low %vm1317_vm3, %vm1317_vm3 }
 0x13a   : > { %v3052_v31 = vpop.eup %3051  ;;  %v895_v2 = vadd.f32 %v855_v57, %v671_v41  ;;  %2883 = vmatpush3.bf16.msra.mxu0 %v2980_v44 }
 0x13b   : > { %v906_v49 = vpack.c.bf16 %v898_v52, %v897_v55  ;;  %v786_v34 = vmul.f32 0.6931472, %v3052_v31  ;;  %2884 = vmatprep.subr.bf16.mxu0 %v2981_v51 }
 0x13c   : > { %v3054_v18 = vpop.eup %3053 }
 0x13d   : > { %v792_v45 = vsel %vm791_vm0, %v789_v32, %v786_v34  ;;  %v858_v21 = vmul.f32 0.6931472, %v3054_v18 }
 0x13e   : > { %v888_v35 = vadd.f32 %v792_v45, %v664_v19  ;;  %2885 = vmatpush3.bf16.msra.mxu0 %v2981_v51 }
 0x13f   : > { %v864_v7 = vsel %vm863_vm2, %v861_v59, %v858_v21  ;;  %2886 = vmatprep.subr.bf16.mxu0 %v2982_v38  ;;  %v1324_v59 = vsub.s32 0, %v3820_v24 }
 0x140   : > { %v901_v10 = vpack.c.bf16 %v888_v35, %v887_v43  ;;  %v896_v63 = vadd.f32 %v864_v7, %v672_v12  ;;  %v3319_v43 = vmov 0  }
 0x141   : > { %v1321_v57 = vsel %vm1320_vm4, 65537, %v3319_v43 }
 0x142   : > { %2868 = vmatprep.mubr.msk.bf16.mxu1 %vm537_vm1, %v901_v10  ;;  %v905_v61 = vpack.c.bf16 %v896_v63, %v895_v2  ;;  %2887 = vmatpush3.bf16.msra.mxu0 %v2982_v38 }
 0x143   : > { %2869 = vmatmul.mubr.msk.bf16.gmra.mrb[12].mxu1 %vm537_vm1, %v902_v27 }
 0x144   : > { %2872 = vmatprep.mubr.msk.bf16.mxu1 %vm537_vm1, %v903_v22 }
 0x14b   : > { %2873 = vmatmul.mubr.msk.bf16.gmra.mrb[16].mxu1 %vm537_vm1, %v904_v28  ;;  %v3802_v28 = vld [vmem:[%s4591_s5] ss:$0 sm:$0xff] }
 0x14c   : > { %2876 = vmatprep.mubr.msk.bf16.mxu1 %vm537_vm1, %v905_v61 }
 0x153   : > { %2877 = vmatmul.mubr.msk.bf16.gmra.mrb[20].mxu1 %vm537_vm1, %v906_v49 }
 0x1f3   : > { %v2866_v17 = vpop.f32.mrb[8].mxu1 }
 0x1f4   : > { %v3805_v30 = vadd.f32 %v2866_v17, %v3802_v28  ;;  %v1004_v22 = vpop.f32.mrb[9].mxu1  ;;  %v3829_v17 = vrot.slane %v1321_v57, %v1324_v59 }
 0x1f5   : > { %v3808_v26 = vadd.f32 %v3802_v28, %v1004_v22  ;;  %v2867_v47 = vpop.f32.mrb[10].mxu1 }
 0x1f6   : > { %v1085_v40 = vand.u32 2147483647, %v3805_v30  ;;  %v3812_v13 = vadd.f32 %v2867_v47, %v3802_v28  ;;  %v1007_v0 = vpop.f32.mrb[11].mxu1  ;;  %v1069_v21 = vmax.f32 %v3805_v30, 0.0  ;;  %vm1326_vm9 = vcmp.ne.s16.totalorder %v3829_v17, 0 }
 0x1f7   : > { %v1083_v54 = vand.u32 2147483647, %v3808_v26  ;;  %v3816_v4 = vadd.f32 %v3802_v28, %v1007_v0  ;;  %v1067_v63 = vmax.f32 %v3808_v26, 0.0  ;;  %v4028_v17 = vld [vmem:[%s4593_s7] ss:$0 sm:$0xff] }
 0x1f8   : > { %v1101_v15 = vsub.f32 0.0, %v1085_v40  ;;  %v1086_v20 = vand.u32 2147483647, %v3812_v13  ;;  %v1070_v26 = vmax.f32 %v3812_v13, 0.0 }
 0x1f9   : > { %v1099_v55 = vsub.f32 0.0, %v1083_v54  ;;  %v1084_v11 = vand.u32 2147483647, %v3816_v4 }
 0x1fa   : > { %v1119_v14 = vmul.f32 1.442695, %v1101_v15  ;;  %v1102_v60 = vsub.f32 0.0, %v1086_v20  ;;  %v1068_v15 = vmax.f32 %v3816_v4, 0.0 }
 0x1fb   : > { %v1115_v25 = vmul.f32 1.442695, %v1099_v55  ;;  %v1100_v9 = vsub.f32 0.0, %v1084_v11 }
 0x1fc   : > { %3055 = vpow2.f32 %v1119_v14  ;;  %v1121_v3 = vmul.f32 1.442695, %v1102_v60 }
 0x1fd   : > { %3057 = vpow2.f32 %v1115_v25  ;;  %v1117_v50 = vmul.f32 1.442695, %v1100_v9 }
 0x1fe   : > { %3059 = vpow2.f32 %v1121_v3 }
 0x1ff   : > { %3061 = vpow2.f32 %v1117_v50 }
 0x206   : > { %v3056_v27 = vpop.eup %3055 }
 0x207   : > { %v3058_v52 = vpop.eup %3057  ;;  %v1165_v56 = vadd.f32 1.0, %v3056_v27  ;;  %v1168_v49 = vmul.f32 -0.5, %v3056_v27  ;;  %v1171_v19 = vand.u32 2147483647, %v3056_v27 }
 0x208   : > { %v3060_v16 = vpop.eup %3059  ;;  %v1147_v8 = vadd.f32 1.0, %v3058_v52  ;;  %v1150_v6 = vmul.f32 -0.5, %v3058_v52  ;;  %v1153_v41 = vand.u32 2147483647, %v3058_v52 }
 0x209   : > { %v3062_v31 = vpop.eup %3061  ;;  %3063 = vlog2.f32 %v1165_v56  ;;  %v1174_v23 = vadd.f32 1.0, %v3060_v16  ;;  %v1177_v34 = vmul.f32 -0.5, %v3060_v16  ;;  %v1169_v32 = vadd.f32 1.0, %v1168_v49 }
 0x20a   : > { %3065 = vlog2.f32 %v1147_v8  ;;  %v1156_v48 = vadd.f32 1.0, %v3062_v31  ;;  %v1159_v53 = vmul.f32 -0.5, %v3062_v31  ;;  %v1151_v18 = vadd.f32 1.0, %v1150_v6 }
 0x20b   : > { %3067 = vlog2.f32 %v1174_v23  ;;  %v1178_v45 = vadd.f32 1.0, %v1177_v34  ;;  %v1180_v12 = vand.u32 2147483647, %v3060_v16  ;;  %v1170_v2 = vmul.f32 %v3056_v27, %v1169_v32 }
 0x20c   : > { %3069 = vlog2.f32 %v1156_v48  ;;  %v1160_v61 = vadd.f32 1.0, %v1159_v53  ;;  %vm3825_vm5 = vcmp.lt.f32.partialorder %v1171_v19, 0.0004427343  ;;  %v1162_v38 = vand.u32 2147483647, %v3062_v31 }
 0x20d   : > { %v1152_v22 = vmul.f32 %v3058_v52, %v1151_v18  ;;  %v1179_v40 = vmul.f32 %v3060_v16, %v1178_v45  ;;  %vm3833_vm6 = vcmp.lt.f32.partialorder %v1153_v41, 0.0004427343  ;;  %vm1181_vm7 = vcmp.lt.f32.partialorder %v1180_v12, 0.0004427343 }
 0x20e   : > { %v1161_v14 = vmul.f32 %v3062_v31, %v1160_v61  ;;  %vm1163_vm8 = vcmp.lt.f32.partialorder %v1162_v38, 0.0004427343 }
 0x213   : > { %v3064_v35 = vpop.eup %3063 }
 0x214   : > { %v3066_v10 = vpop.eup %3065  ;;  %v1167_v7 = vmul.f32 0.6931472, %v3064_v35 }
 0x215   : > { %v3068_v36 = vpop.eup %3067  ;;  %v1149_v51 = vmul.f32 0.6931472, %v3066_v10 }
 0x216   : > { %v1173_v30 = vsel %vm3825_vm5, %v1170_v2, %v1167_v7  ;;  %v1176_v47 = vmul.f32 0.6931472, %v3068_v36  ;;  %v3070_v0 = vpop.eup %3069  ;;  %v2870_v60 = vpop.f32.mrb[12].mxu1 }
 0x217   : > { %v1155_v20 = vsel %vm3833_vm6, %v1152_v22, %v1149_v51  ;;  %v1158_v11 = vmul.f32 0.6931472, %v3070_v0  ;;  %v1293_v25 = vadd.f32 %v1173_v30, %v1069_v21  ;;  %v3842_v3 = vadd.f32 %v2870_v60, %v3802_v28  ;;  %v1020_v50 = vpop.f32.mrb[13].mxu1 }
 0x218   : > { %v1182_v55 = vsel %vm1181_vm7, %v1179_v40, %v1176_v47  ;;  %v3845_v13 = vadd.f32 %v3802_v28, %v1020_v50  ;;  %v2871_v27 = vpop.f32.mrb[14].mxu1  ;;  %v1291_v4 = vadd.f32 %v1155_v20, %v1067_v63 }
 0x219   : > { %v1294_v9 = vadd.f32 %v1182_v55, %v1070_v26  ;;  %v1164_v39 = vsel %vm1163_vm8, %v1161_v14, %v1158_v11  ;;  %v1089_v16 = vand.u32 2147483647, %v3842_v3  ;;  %v1023_v8 = vpop.f32.mrb[15].mxu1  ;;  %v3850_v31 = vadd.f32 %v2871_v27, %v3802_v28 }
 0x21a   : > { %v1292_v56 = vadd.f32 %v1164_v39, %v1068_v15  ;;  %v1087_v29 = vand.u32 2147483647, %v3845_v13  ;;  %v3853_v23 = vadd.f32 %v3802_v28, %v1023_v8  ;;  %v1073_v50 = vmax.f32 %v3842_v3, 0.0 }
 0x21b   : > { %v1308_v52 = vpack.c.bf16 %v1294_v9, %v1293_v25  ;;  %v1105_v49 = vsub.f32 0.0, %v1089_v16  ;;  %v1090_v34 = vand.u32 2147483647, %v3850_v31  ;;  %v1071_v39 = vmax.f32 %v3845_v13, 0.0 }
 0x21c   : > { %v1307_v48 = vpack.c.bf16 %v1292_v56, %v1291_v4  ;;  %v1103_v6 = vsub.f32 0.0, %v1087_v29  ;;  %v1088_v53 = vand.u32 2147483647, %v3853_v23  ;;  %v1074_v56 = vmax.f32 %v3850_v31, 0.0 }
 0x21d   : > { %v1127_v32 = vmul.f32 1.442695, %v1105_v49  ;;  %v1106_v18 = vsub.f32 0.0, %v1090_v34  ;;  %v1328_v43 = vsel %vm1326_vm9, %v3450_v42, %v1308_v52  ;;  %v1072_v16 = vmax.f32 %v3853_v23, 0.0 }
 0x21e   : > { %v1327_v19 = vsel %vm1326_vm9, %v3441_v33, %v1307_v48  ;;  %v1123_v59 = vmul.f32 1.442695, %v1103_v6  ;;  %v2874_v45 = vpop.f32.mrb[16].mxu1  ;;  %v1104_v57 = vsub.f32 0.0, %v1088_v53 }
 0x21f   : > { %2888 = vmatprep.mubr.msk.bf16.mxu0 %vm537_vm1, %v1327_v19  ;;  %3071 = vpow2.f32 %v1127_v32  ;;  %v3866_v35 = vadd.f32 %v2874_v45, %v3802_v28  ;;  %v1036_v21 = vpop.f32.mrb[17].mxu1  ;;  %v1129_v41 = vmul.f32 1.442695, %v1106_v18 }
 0x220   : > { %2889 = vmatmul.mubr.msk.bf16.vlgmr.msra.gmra.mrb[8].mxu0 %vm537_vm1, %v1328_v43  ;;  %3073 = vpow2.f32 %v1123_v59  ;;  %v3870_v33 = vadd.f32 %v3802_v28, %v1036_v21  ;;  %v2875_v12 = vpop.f32.mrb[18].mxu1  ;;  %v1125_v10 = vmul.f32 1.442695, %v1104_v57 }
 0x221   : > { %v1093_v7 = vand.u32 2147483647, %v3866_v35  ;;  %v3874_v2 = vadd.f32 %v2875_v12, %v3802_v28  ;;  %v1039_v42 = vpop.f32.mrb[19].mxu1  ;;  %3075 = vpow2.f32 %v1129_v41  ;;  %v1077_v6 = vmax.f32 %v3866_v35, 0.0 }
 0x222   : > { %v1091_v63 = vand.u32 2147483647, %v3870_v33  ;;  %v3878_v61 = vadd.f32 %v3802_v28, %v1039_v42  ;;  %3077 = vpow2.f32 %v1125_v10  ;;  %v1075_v45 = vmax.f32 %v3870_v33, 0.0 }
 0x223   : > { %v1109_v36 = vsub.f32 0.0, %v1093_v7  ;;  %v1094_v44 = vand.u32 2147483647, %v3874_v2  ;;  %v1078_v57 = vmax.f32 %v3874_v2, 0.0 }
 0x224   : > { %v1107_v51 = vsub.f32 0.0, %v1091_v63  ;;  %v1092_v38 = vand.u32 2147483647, %v3878_v61  ;;  %v1076_v10 = vmax.f32 %v3878_v61, 0.0 }
 0x225   : > { %v1135_v30 = vmul.f32 1.442695, %v1109_v36  ;;  %v1110_v22 = vsub.f32 0.0, %v1094_v44 }
 0x226   : > { %v1131_v47 = vmul.f32 1.442695, %v1107_v51  ;;  %v1108_v40 = vsub.f32 0.0, %v1092_v38  ;;  %v2878_v0 = vpop.f32.mrb[20].mxu1 }
 0x227   : > { %3079 = vpow2.f32 %v1135_v30  ;;  %v1137_v54 = vmul.f32 1.442695, %v1110_v22  ;;  %v1052_v26 = vpop.f32.mrb[21].mxu1  ;;  %v3883_v20 = vadd.f32 %v2878_v0, %v3802_v28 }
 0x228   : > { %3081 = vpow2.f32 %v1131_v47  ;;  %v1133_v15 = vmul.f32 1.442695, %v1108_v40  ;;  %v2879_v55 = vpop.f32.mrb[22].mxu1  ;;  %v3901_v7 = vadd.f32 %v3802_v28, %v1052_v26 }
 0x229   : > { %v3072_v11 = vpop.eup %3071  ;;  %3083 = vpow2.f32 %v1137_v54  ;;  %v3885_v14 = vpop.f32.mrb[23].mxu1  ;;  %v1097_v8 = vand.u32 2147483647, %v3883_v20  ;;  %v3904_v42 = vadd.f32 %v2879_v55, %v3802_v28 }
 0x22a   : > { %v3074_v60 = vpop.eup %3073  ;;  %v1201_v25 = vadd.f32 1.0, %v3072_v11  ;;  %v1204_v9 = vmul.f32 -0.5, %v3072_v11  ;;  %3085 = vpow2.f32 %v1133_v15  ;;  %v1207_v48 = vand.u32 2147483647, %v3072_v11 }
 0x22b   : > { %v1183_v27 = vadd.f32 1.0, %v3074_v60  ;;  %v1186_v4 = vmul.f32 -0.5, %v3074_v60  ;;  %v3076_v52 = vpop.eup %3075  ;;  %v1189_v53 = vand.u32 2147483647, %v3074_v60  ;;  %v1113_v21 = vsub.f32 0.0, %v1097_v8 }
 0x22c   : > { %3087 = vlog2.f32 %v1201_v25  ;;  %v3078_v29 = vpop.eup %3077  ;;  %v1210_v49 = vadd.f32 1.0, %v3076_v52  ;;  %v1205_v34 = vadd.f32 1.0, %v1204_v9  ;;  %v1213_v59 = vmul.f32 -0.5, %v3076_v52 }
 0x22d   : > { %3089 = vlog2.f32 %v1183_v27  ;;  %v1187_v32 = vadd.f32 1.0, %v1186_v4  ;;  %v1192_v19 = vadd.f32 1.0, %v3078_v29  ;;  %v1216_v18 = vand.u32 2147483647, %v3076_v52 }
 0x22e   : > { %3091 = vlog2.f32 %v1210_v49  ;;  %v1195_v43 = vmul.f32 -0.5, %v3078_v29  ;;  %vm3895_vm10 = vcmp.lt.f32.partialorder %v1207_v48, 0.0004427343  ;;  %v1206_v36 = vmul.f32 %v3072_v11, %v1205_v34 }
 0x22f   : > { %3093 = vlog2.f32 %v1192_v19  ;;  %v1188_v44 = vmul.f32 %v3074_v60, %v1187_v32  ;;  %vm3908_vm11 = vcmp.lt.f32.partialorder %v1189_v53, 0.0004427343  ;;  %v1214_v47 = vadd.f32 1.0, %v1213_v59 }
 0x230   : > { %vm3914_vm12 = vcmp.lt.f32.partialorder %v1216_v18, 0.0004427343  ;;  %v1198_v0 = vand.u32 2147483647, %v3078_v29  ;;  %v1196_v15 = vadd.f32 1.0, %v1195_v43 }
 0x231   : > { %v3080_v41 = vpop.eup %3079  ;;  %v1143_v11 = vmul.f32 1.442695, %v1113_v21  ;;  %v1215_v32 = vmul.f32 %v3076_v52, %v1214_v47  ;;  %v1095_v19 = vand.u32 2147483647, %v3901_v7 }
 0x232   : > { %v3906_v63 = vpop.eup %3081  ;;  %v1237_v38 = vadd.f32 1.0, %v3080_v41  ;;  %v1240_v30 = vmul.f32 -0.5, %v3080_v41  ;;  %v1243_v25 = vand.u32 2147483647, %v3080_v41  ;;  %vm3926_vm13 = vcmp.lt.f32.partialorder %v1198_v0, 0.0004427343 }
 0x233   : > { %v3912_v22 = vpop.eup %3083  ;;  %v1219_v54 = vadd.f32 1.0, %v3906_v63  ;;  %v1222_v9 = vmul.f32 -0.5, %v3906_v63  ;;  %v1225_v4 = vand.u32 2147483647, %v3906_v63  ;;  %v1197_v18 = vmul.f32 %v3078_v29, %v1196_v15 }
 0x234   : > { %v3919_v26 = vpop.eup %3085  ;;  %3095 = vlog2.f32 %v1237_v38  ;;  %v1246_v55 = vadd.f32 1.0, %v3912_v22  ;;  %v1241_v60 = vadd.f32 1.0, %v1240_v30  ;;  %v1249_v8 = vmul.f32 -0.5, %v3912_v22 }
 0x235   : > { %3097 = vlog2.f32 %v1219_v54  ;;  %v1228_v48 = vadd.f32 1.0, %v3919_v26  ;;  %v1231_v43 = vmul.f32 -0.5, %v3919_v26  ;;  %vm3932_vm14 = vcmp.lt.f32.partialorder %v1243_v25, 0.0004427343 }
 0x236   : > { %v3088_v27 = vpop.eup %3087  ;;  %3099 = vlog2.f32 %v1246_v55  ;;  %v1242_v38 = vmul.f32 %v3080_v41, %v1241_v60  ;;  %v1223_v54 = vadd.f32 1.0, %v1222_v9  ;;  %vm3938_vm15 = vcmp.lt.f32.partialorder %v1225_v4, 0.0004427343 }
 0x237   : > { %v3090_v49 = vpop.eup %3089  ;;  %v1203_v34 = vmul.f32 0.6931472, %v3088_v27  ;;  %3101 = vlog2.f32 %v1228_v48  ;;  %v1250_v29 = vadd.f32 1.0, %v1249_v8  ;;  %v1252_v15 = vand.u32 2147483647, %v3912_v22 }
 0x238   : > { %v1185_v59 = vmul.f32 0.6931472, %v3090_v49  ;;  %v3092_v21 = vpop.eup %3091  ;;  %3103 = vpow2.f32 %v1143_v11  ;;  %v1234_v25 = vand.u32 2147483647, %v3919_v26  ;;  %v1111_v9 = vsub.f32 0.0, %v1095_v19 }
 0x239   : > { %v3094_v52 = vpop.eup %3093  ;;  %v1209_v47 = vsel %vm3895_vm10, %v1206_v36, %v1203_v34  ;;  %v1212_v0 = vmul.f32 0.6931472, %v3092_v21  ;;  %v1232_v12 = vadd.f32 1.0, %v1231_v43  ;;  %v1098_v36 = vand.u32 2147483647, %v3904_v42 }
 0x23a   : > { %v1191_v41 = vsel %vm3908_vm11, %v1188_v44, %v1185_v59  ;;  %v1194_v60 = vmul.f32 0.6931472, %v3094_v52  ;;  %v3951_v27 = vadd.f32 %v3802_v28, %v3885_v14  ;;  %v1297_v4 = vadd.f32 %v1209_v47, %v1073_v50 }
 0x23b   : > { %v1218_v11 = vsel %vm3914_vm12, %v1215_v32, %v1212_v0  ;;  %v1139_v8 = vmul.f32 1.442695, %v1111_v9  ;;  %v1295_v40 = vadd.f32 %v1191_v41, %v1071_v39  ;;  %v1114_v34 = vsub.f32 0.0, %v1098_v36 }
 0x23c   : > { %v1298_v44 = vadd.f32 %v1218_v11, %v1074_v56  ;;  %v1200_v51 = vsel %vm3926_vm13, %v1197_v18, %v1194_v60  ;;  %v1096_v28 = vand.u32 2147483647, %v3951_v27  ;;  %v1224_v31 = vmul.f32 %v3906_v63, %v1223_v54 }
 0x23d   : > { %v1296_v49 = vadd.f32 %v1200_v51, %v1072_v16  ;;  %3105 = vpow2.f32 %v1139_v8  ;;  %v1145_v19 = vmul.f32 1.442695, %v1114_v34  ;;  %v1251_v23 = vmul.f32 %v3912_v22, %v1250_v29 }
 0x23e   : > { %v3096_v48 = vpop.eup %3095  ;;  %v1310_v3 = vpack.c.bf16 %v1298_v44, %v1297_v4  ;;  %v1112_v59 = vsub.f32 0.0, %v1096_v28  ;;  %vm1253_vm0 = vcmp.lt.f32.partialorder %v1252_v15, 0.0004427343  ;;  %v1233_v18 = vmul.f32 %v3919_v26, %v1232_v12 }
 0x23f   : > { %v3098_v14 = vpop.eup %3097  ;;  %v1239_v50 = vmul.f32 0.6931472, %v3096_v48  ;;  %v1309_v32 = vpack.c.bf16 %v1296_v49, %v1295_v40  ;;  %vm3969_vm2 = vcmp.lt.f32.partialorder %v1234_v25, 0.0004427343  ;;  %3107 = vpow2.f32 %v1145_v19 }
 0x240   : > { %v3100_v56 = vpop.eup %3099  ;;  %v1221_v53 = vmul.f32 0.6931472, %v3098_v14  ;;  %v1141_v63 = vmul.f32 1.442695, %v1112_v59  ;;  %v1330_v0 = vsel %vm1326_vm9, %v3483_v1, %v1310_v3  ;;  %v1081_v14 = vmax.f32 %v3883_v20, 0.0 }
 0x241   : > { %v1245_v13 = vsel %vm3932_vm14, %v1242_v38, %v1239_v50  ;;  %v1248_v39 = vmul.f32 0.6931472, %v3100_v56  ;;  %v3102_v16 = vpop.eup %3101  ;;  %v1329_v22 = vsel %vm1326_vm9, %v3472_v58, %v1309_v32  ;;  %v1082_v32 = vmax.f32 %v3904_v42, 0.0 }
 0x242   : > { %v3104_v21 = vpop.eup %3103  ;;  %v1227_v54 = vsel %vm3938_vm15, %v1224_v31, %v1221_v53  ;;  %v1230_v30 = vmul.f32 0.6931472, %v3102_v16  ;;  %v1301_v38 = vadd.f32 %v1245_v13, %v1077_v6  ;;  %2892 = vmatprep.mubr.msk.bf16.mxu0 %vm537_vm1, %v1329_v22  ;;  %3109 = vpow2.f32 %v1141_v63 }
 0x243   : > { %v1254_v52 = vsel %vm1253_vm0, %v1251_v23, %v1248_v39  ;;  %v1273_v47 = vadd.f32 1.0, %v3104_v21  ;;  %2893 = vmatmul.mubr.msk.bf16.gmra.mrb[12].mxu0 %vm537_vm1, %v1330_v0  ;;  %v1299_v58 = vadd.f32 %v1227_v54, %v1075_v45  ;;  %v1279_v11 = vand.u32 2147483647, %v3104_v21 }
 0x244   : > { %v1302_v26 = vadd.f32 %v1254_v52, %v1078_v57  ;;  %v1236_v55 = vsel %vm3969_vm2, %v1233_v18, %v1230_v30  ;;  %v1079_v18 = vmax.f32 %v3901_v7, 0.0  ;;  %v1080_v43 = vmax.f32 %v3951_v27, 0.0  ;;  %v2983_v7 = vld [vmem:[%s4594_s8] sm:$0xff]   ;;  %v2984_v27 = vld [vmem:[%s4594_s8 + $0x8] sm:$0xff]  }
 0x245   : > { %v1300_v2 = vadd.f32 %v1236_v55, %v1076_v10  ;;  %3111 = vlog2.f32 %v1273_v47  ;;  %v1276_v10 = vmul.f32 -0.5, %v3104_v21  ;;  %vm1280_vm3 = vcmp.lt.f32.partialorder %v1279_v11, 0.0004427343  ;;  %2904 = vmatprep.subr.bf16.mxu1 %v2983_v7 }
 0x246   : > { %v1312_v35 = vpack.c.bf16 %v1302_v26, %v1301_v38  ;;  %2905 = vmatpush3.bf16.msra.mxu1 %v2983_v7 }
 0x247   : > { %v1311_v6 = vpack.c.bf16 %v1300_v2, %v1299_v58  ;;  %v3106_v57 = vpop.eup %3105  ;;  %v1277_v9 = vadd.f32 1.0, %v1276_v10  ;;  %2906 = vmatprep.subr.bf16.mxu1 %v2984_v27 }
 0x248   : > { %v1255_v29 = vadd.f32 1.0, %v3106_v57  ;;  %v1332_v33 = vsel %vm1326_vm9, %v3456_v46, %v1312_v35  ;;  %v1261_v48 = vand.u32 2147483647, %v3106_v57 }
 0x249   : > { %v1331_v1 = vsel %vm1326_vm9, %v3446_v37, %v1311_v6  ;;  %v3108_v15 = vpop.eup %3107  ;;  %v1258_v37 = vmul.f32 -0.5, %v3106_v57  ;;  %v1278_v51 = vmul.f32 %v3104_v21, %v1277_v9 }
 0x24a   : > { %2896 = vmatprep.mubr.msk.bf16.mxu0 %vm537_vm1, %v1331_v1  ;;  %3113 = vlog2.f32 %v1255_v29  ;;  %v1282_v45 = vadd.f32 1.0, %v3108_v15  ;;  %v1285_v25 = vmul.f32 -0.5, %v3108_v15  ;;  %v1288_v46 = vand.u32 2147483647, %v3108_v15  ;;  %2907 = vmatpush3.bf16.msra.mxu1 %v2984_v27 }
 0x24b   : > { %2897 = vmatmul.mubr.msk.bf16.gmra.mrb[16].mxu0 %vm537_vm1, %v1332_v33  ;;  %v1259_v8 = vadd.f32 1.0, %v1258_v37  ;;  %vm1262_vm5 = vcmp.lt.f32.partialorder %v1261_v48, 0.0004427343 }
 0x24c   : > { %v3110_v61 = vpop.eup %3109  ;;  %3115 = vlog2.f32 %v1282_v45  ;;  %v1286_v44 = vadd.f32 1.0, %v1285_v25  ;;  %vm1289_vm4 = vcmp.lt.f32.partialorder %v1288_v46, 0.0004427343 }
 0x24d   : > { %v1264_v41 = vadd.f32 1.0, %v3110_v61  ;;  %v1267_v36 = vmul.f32 -0.5, %v3110_v61  ;;  %v1270_v31 = vand.u32 2147483647, %v3110_v61  ;;  %v1260_v56 = vmul.f32 %v3106_v57, %v1259_v8 }
 0x24e   : > { %v1287_v50 = vmul.f32 %v3108_v15, %v1286_v44 }
 0x24f   : > { %v3112_v60 = vpop.eup %3111  ;;  %3117 = vlog2.f32 %v1264_v41  ;;  %v1268_v28 = vadd.f32 1.0, %v1267_v36  ;;  %vm1271_vm6 = vcmp.lt.f32.partialorder %v1270_v31, 0.0004427343 }
 0x250   : > { %v1275_v12 = vmul.f32 0.6931472, %v3112_v60 }
 0x251   : > { %v1269_v16 = vmul.f32 %v3110_v61, %v1268_v28 }
 0x252   : > { %v1281_v49 = vsel %vm1280_vm3, %v1278_v51, %v1275_v12 }
 0x253   : > { %v1305_v19 = vadd.f32 %v1281_v49, %v1081_v14 }
 0x254   : > { %v3114_v4 = vpop.eup %3113 }
 0x255   : > { %v1257_v34 = vmul.f32 0.6931472, %v3114_v4 }
 0x256   : > { %v3116_v40 = vpop.eup %3115 }
 0x257   : > { %v1284_v3 = vmul.f32 0.6931472, %v3116_v40  ;;  %v1263_v13 = vsel %vm1262_vm5, %v1260_v56, %v1257_v34 }
 0x258   : > { %v1303_v21 = vadd.f32 %v1263_v13, %v1079_v18 }
 0x259   : > { %v3118_v53 = vpop.eup %3117  ;;  %v1290_v59 = vsel %vm1289_vm4, %v1287_v50, %v1284_v3 }
 0x25a   : > { %v1306_v39 = vadd.f32 %v1290_v59, %v1082_v32  ;;  %v1266_v23 = vmul.f32 0.6931472, %v3118_v53 }
 0x25c   : > { %v1314_v20 = vpack.c.bf16 %v1306_v39, %v1305_v19  ;;  %v1272_v63 = vsel %vm1271_vm6, %v1269_v16, %v1266_v23 }
 0x25d   : > { %v1304_v54 = vadd.f32 %v1272_v63, %v1080_v43 }
 0x25e   : > { %v1334_v30 = vsel %vm1326_vm9, %v3488_v5, %v1314_v20  ;;  %v2986_v5 = vld [vmem:[%s4594_s8 + $0x18] sm:$0xff]  }
 0x25f   : > { %v1313_v52 = vpack.c.bf16 %v1304_v54, %v1303_v21 }
 0x261   : > { %v1333_v42 = vsel %vm1326_vm9, %v3476_v62, %v1313_v52  ;;  %v2985_v62 = vld [vmem:[%s4594_s8 + $0x10] sm:$0xff]  }
 0x262   : > { %2900 = vmatprep.mubr.msk.bf16.mxu0 %vm537_vm1, %v1333_v42  ;;  %2908 = vmatprep.subr.bf16.mxu1 %v2985_v62 }
 0x263   : > { %2901 = vmatmul.mubr.msk.bf16.gmra.mrb[20].mxu0 %vm537_vm1, %v1334_v30  ;;  %2909 = vmatpush3.bf16.msra.mxu1 %v2985_v62 }
 0x264   : > { %2910 = vmatprep.subr.bf16.mxu1 %v2986_v5 }
 0x267   : > { %2911 = vmatpush3.bf16.msra.mxu1 %v2986_v5 }
 0x2f3   : > { %v2890_v22 = vpop.f32.mrb[8].mxu0 }
 0x2f4   : > { %v4031_v38 = vadd.f32 %v2890_v22, %v4028_v17  ;;  %v1432_v26 = vpop.f32.mrb[9].mxu0 }
 0x2f5   : > { %v4034_v47 = vadd.f32 %v4028_v17, %v1432_v26  ;;  %v2891_v0 = vpop.f32.mrb[10].mxu0 }
 0x2f6   : > { %v1513_v55 = vand.u32 2147483647, %v4031_v38  ;;  %v4038_v58 = vadd.f32 %v2891_v0, %v4028_v17  ;;  %v1435_v35 = vpop.f32.mrb[11].mxu0  ;;  %v1497_v56 = vmax.f32 %v4031_v38, 0.0 }
 0x2f7   : > { %v1511_v2 = vand.u32 2147483647, %v4034_v47  ;;  %v4042_v6 = vadd.f32 %v4028_v17, %v1435_v35  ;;  %v1495_v21 = vmax.f32 %v4034_v47, 0.0 }
 0x2f8   : > { %v1529_v57 = vsub.f32 0.0, %v1513_v55  ;;  %v1514_v29 = vand.u32 2147483647, %v4038_v58  ;;  %v1498_v54 = vmax.f32 %v4038_v58, 0.0 }
 0x2f9   : > { %v1527_v1 = vsub.f32 0.0, %v1511_v2  ;;  %v1512_v15 = vand.u32 2147483647, %v4042_v6  ;;  %v1496_v5 = vmax.f32 %v4042_v6, 0.0 }
 0x2fa   : > { %v1547_v33 = vmul.f32 1.442695, %v1529_v57  ;;  %v1530_v45 = vsub.f32 0.0, %v1514_v29 }
 0x2fb   : > { %v1543_v61 = vmul.f32 1.442695, %v1527_v1  ;;  %v1528_v10 = vsub.f32 0.0, %v1512_v15 }
 0x2fc   : > { %3119 = vpow2.f32 %v1547_v33  ;;  %v1549_v41 = vmul.f32 1.442695, %v1530_v45 }
 0x2fd   : > { %3121 = vpow2.f32 %v1543_v61  ;;  %v1545_v60 = vmul.f32 1.442695, %v1528_v10 }
 0x2fe   : > { %3123 = vpow2.f32 %v1549_v41 }
 0x2ff   : > { %3125 = vpow2.f32 %v1545_v60 }
 0x306   : > { %v3120_v25 = vpop.eup %3119 }
 0x307   : > { %v3122_v9 = vpop.eup %3121  ;;  %v1593_v37 = vadd.f32 1.0, %v3120_v25  ;;  %v1596_v51 = vmul.f32 -0.5, %v3120_v25  ;;  %v1599_v49 = vand.u32 2147483647, %v3120_v25 }
 0x308   : > { %v3124_v11 = vpop.eup %3123  ;;  %v1575_v12 = vadd.f32 1.0, %v3122_v9  ;;  %v1578_v8 = vmul.f32 -0.5, %v3122_v9  ;;  %v1581_v3 = vand.u32 2147483647, %v3122_v9 }
 0x309   : > { %v3126_v36 = vpop.eup %3125  ;;  %3127 = vlog2.f32 %v1593_v37  ;;  %v1602_v4 = vadd.f32 1.0, %v3124_v11  ;;  %v1605_v46 = vmul.f32 -0.5, %v3124_v11  ;;  %v1597_v48 = vadd.f32 1.0, %v1596_v51 }
 0x30a   : > { %3129 = vlog2.f32 %v1575_v12  ;;  %v1584_v44 = vadd.f32 1.0, %v3126_v36  ;;  %v1587_v40 = vmul.f32 -0.5, %v3126_v36  ;;  %v1579_v34 = vadd.f32 1.0, %v1578_v8 }
 0x30b   : > { %3131 = vlog2.f32 %v1602_v4  ;;  %v1606_v28 = vadd.f32 1.0, %v1605_v46  ;;  %v1608_v50 = vand.u32 2147483647, %v3124_v11  ;;  %v1598_v53 = vmul.f32 %v3120_v25, %v1597_v48 }
 0x30c   : > { %3133 = vlog2.f32 %v1584_v44  ;;  %v1588_v19 = vadd.f32 1.0, %v1587_v40  ;;  %vm4047_vm7 = vcmp.lt.f32.partialorder %v1599_v49, 0.0004427343  ;;  %v1590_v23 = vand.u32 2147483647, %v3126_v36 }
 0x30d   : > { %v1580_v18 = vmul.f32 %v3122_v9, %v1579_v34  ;;  %v1607_v20 = vmul.f32 %v3124_v11, %v1606_v28  ;;  %vm1582_vm8 = vcmp.lt.f32.partialorder %v1581_v3, 0.0004427343  ;;  %vm1609_vm9 = vcmp.lt.f32.partialorder %v1608_v50, 0.0004427343 }
 0x30e   : > { %v1589_v7 = vmul.f32 %v3126_v36, %v1588_v19  ;;  %vm1591_vm10 = vcmp.lt.f32.partialorder %v1590_v23, 0.0004427343 }
 0x313   : > { %v3128_v14 = vpop.eup %3127 }
 0x314   : > { %v3130_v31 = vpop.eup %3129  ;;  %v1595_v32 = vmul.f32 0.6931472, %v3128_v14 }
 0x315   : > { %v3132_v59 = vpop.eup %3131  ;;  %v1577_v39 = vmul.f32 0.6931472, %v3130_v31 }
 0x316   : > { %v1601_v16 = vsel %vm4047_vm7, %v1598_v53, %v1595_v32  ;;  %v1604_v43 = vmul.f32 0.6931472, %v3132_v59  ;;  %v3134_v63 = vpop.eup %3133  ;;  %v2894_v22 = vpop.f32.mrb[12].mxu0 }
 0x317   : > { %v1583_v52 = vsel %vm1582_vm8, %v1580_v18, %v1577_v39  ;;  %v1586_v30 = vmul.f32 0.6931472, %v3134_v63  ;;  %v1721_v27 = vadd.f32 %v1601_v16, %v1497_v56  ;;  %v4057_v26 = vadd.f32 %v2894_v22, %v4028_v17  ;;  %v1448_v0 = vpop.f32.mrb[13].mxu0 }
 0x318   : > { %v1610_v42 = vsel %vm1609_vm9, %v1607_v20, %v1604_v43  ;;  %v1719_v47 = vadd.f32 %v1583_v52, %v1495_v21  ;;  %v4060_v58 = vadd.f32 %v4028_v17, %v1448_v0  ;;  %v2895_v2 = vpop.f32.mrb[14].mxu0 }
 0x319   : > { %v1722_v62 = vadd.f32 %v1610_v42, %v1498_v54  ;;  %v1592_v38 = vsel %vm1591_vm10, %v1589_v7, %v1586_v30  ;;  %v1517_v57 = vand.u32 2147483647, %v4057_v26  ;;  %v4064_v29 = vadd.f32 %v2895_v2, %v4028_v17  ;;  %v1451_v6 = vpop.f32.mrb[15].mxu0 }
 0x31a   : > { %v1720_v35 = vadd.f32 %v1592_v38, %v1496_v5  ;;  %v1515_v15 = vand.u32 2147483647, %v4060_v58  ;;  %v4068_v33 = vadd.f32 %v4028_v17, %v1451_v6  ;;  %v1501_v63 = vmax.f32 %v4057_v26, 0.0 }
 0x31b   : > { %v1736_v55 = vpack.c.bf16 %v1722_v62, %v1721_v27  ;;  %v1533_v45 = vsub.f32 0.0, %v1517_v57  ;;  %v1518_v61 = vand.u32 2147483647, %v4064_v29  ;;  %v1499_v21 = vmax.f32 %v4060_v58, 0.0 }
 0x31c   : > { %v1735_v1 = vpack.c.bf16 %v1720_v35, %v1719_v47  ;;  %v1531_v10 = vsub.f32 0.0, %v1515_v15  ;;  %v1516_v41 = vand.u32 2147483647, %v4068_v33  ;;  %v1502_v30 = vmax.f32 %v4064_v29, 0.0 }
 0x31d   : > { %v1555_v60 = vmul.f32 1.442695, %v1533_v45  ;;  %v1534_v25 = vsub.f32 0.0, %v1518_v61  ;;  %v1500_v38 = vmax.f32 %v4068_v33, 0.0 }
 0x31e   : > { %2912 = vmatprep.mubr.msk.bf16.mxu1 %vm537_vm1, %v1735_v1  ;;  %v1551_v9 = vmul.f32 1.442695, %v1531_v10  ;;  %v1532_v37 = vsub.f32 0.0, %v1516_v41  ;;  %v2898_v11 = vpop.f32.mrb[16].mxu0 }
 0x31f   : > { %2913 = vmatmul.mubr.msk.bf16.vlgmr.msra.gmra.mrb[24].mxu1 %vm537_vm1, %v1736_v55  ;;  %3135 = vpow2.f32 %v1555_v60  ;;  %v1557_v12 = vmul.f32 1.442695, %v1534_v25  ;;  %v4075_v36 = vadd.f32 %v2898_v11, %v4028_v17  ;;  %v1464_v4 = vpop.f32.mrb[17].mxu0 }
 0x320   : > { %3137 = vpow2.f32 %v1551_v9  ;;  %v1553_v44 = vmul.f32 1.442695, %v1532_v37  ;;  %v4078_v51 = vadd.f32 %v4028_v17, %v1464_v4  ;;  %v2899_v8 = vpop.f32.mrb[18].mxu0 }
 0x321   : > { %3139 = vpow2.f32 %v1557_v12  ;;  %v1521_v46 = vand.u32 2147483647, %v4075_v36  ;;  %v4082_v48 = vadd.f32 %v2899_v8, %v4028_v17  ;;  %v1467_v40 = vpop.f32.mrb[19].mxu0  ;;  %v1505_v0 = vmax.f32 %v4075_v36, 0.0 }
 0x322   : > { %3141 = vpow2.f32 %v1553_v44  ;;  %v1519_v49 = vand.u32 2147483647, %v4078_v51  ;;  %v4086_v34 = vadd.f32 %v4028_v17, %v1467_v40  ;;  %v1503_v55 = vmax.f32 %v4078_v51, 0.0 }
 0x323   : > { %v1537_v28 = vsub.f32 0.0, %v1521_v46  ;;  %v1522_v14 = vand.u32 2147483647, %v4082_v48  ;;  %v1506_v35 = vmax.f32 %v4082_v48, 0.0 }
 0x324   : > { %v1535_v3 = vsub.f32 0.0, %v1519_v49  ;;  %v1520_v50 = vand.u32 2147483647, %v4086_v34  ;;  %v1504_v15 = vmax.f32 %v4086_v34, 0.0 }
 0x325   : > { %v1563_v31 = vmul.f32 1.442695, %v1537_v28  ;;  %v1538_v56 = vsub.f32 0.0, %v1522_v14 }
 0x326   : > { %v1559_v32 = vmul.f32 1.442695, %v1535_v3  ;;  %v1536_v53 = vsub.f32 0.0, %v1520_v50 }
 0x327   : > { %3143 = vpow2.f32 %v1563_v31  ;;  %v1565_v19 = vmul.f32 1.442695, %v1538_v56 }
 0x328   : > { %3145 = vpow2.f32 %v1559_v32  ;;  %v1561_v59 = vmul.f32 1.442695, %v1536_v53 }
 0x329   : > { %v3136_v13 = vpop.eup %3135  ;;  %3147 = vpow2.f32 %v1565_v19 }
 0x32a   : > { %v3138_v39 = vpop.eup %3137  ;;  %v1629_v23 = vadd.f32 1.0, %v3136_v13  ;;  %v1632_v16 = vmul.f32 -0.5, %v3136_v13  ;;  %3149 = vpow2.f32 %v1561_v59  ;;  %v1635_v52 = vand.u32 2147483647, %v3136_v13 }
 0x32b   : > { %v3140_v18 = vpop.eup %3139  ;;  %v1611_v43 = vadd.f32 1.0, %v3138_v39  ;;  %v1614_v42 = vmul.f32 -0.5, %v3138_v39  ;;  %v1617_v27 = vand.u32 2147483647, %v3138_v39 }
 0x32c   : > { %v3142_v20 = vpop.eup %3141  ;;  %3151 = vlog2.f32 %v1629_v23  ;;  %v1638_v54 = vadd.f32 1.0, %v3140_v18  ;;  %v1633_v7 = vadd.f32 1.0, %v1632_v16  ;;  %v1641_v5 = vmul.f32 -0.5, %v3140_v18 }
 0x32d   : > { %3153 = vlog2.f32 %v1611_v43  ;;  %v1620_v62 = vadd.f32 1.0, %v3142_v20  ;;  %v1644_v22 = vand.u32 2147483647, %v3140_v18  ;;  %v1623_v47 = vmul.f32 -0.5, %v3142_v20 }
 0x32e   : > { %3155 = vlog2.f32 %v1638_v54  ;;  %vm4097_vm11 = vcmp.lt.f32.partialorder %v1635_v52, 0.0004427343  ;;  %v1615_v6 = vadd.f32 1.0, %v1614_v42  ;;  %v1626_v1 = vand.u32 2147483647, %v3142_v20 }
 0x32f   : > { %3157 = vlog2.f32 %v1620_v62  ;;  %v1634_v61 = vmul.f32 %v3136_v13, %v1633_v7  ;;  %vm4102_vm12 = vcmp.lt.f32.partialorder %v1617_v27, 0.0004427343  ;;  %v1642_v9 = vadd.f32 1.0, %v1641_v5 }
 0x330   : > { %vm4106_vm13 = vcmp.lt.f32.partialorder %v1644_v22, 0.0004427343  ;;  %v1624_v44 = vadd.f32 1.0, %v1623_v47  ;;  %vm4112_vm14 = vcmp.lt.f32.partialorder %v1626_v1, 0.0004427343  ;;  %v1616_v53 = vmul.f32 %v3138_v39, %v1615_v6 }
 0x331   : > { %v3144_v2 = vpop.eup %3143  ;;  %v1643_v19 = vmul.f32 %v3140_v18, %v1642_v9 }
 0x332   : > { %v3146_v45 = vpop.eup %3145  ;;  %v1665_v41 = vadd.f32 1.0, %v3144_v2  ;;  %v1668_v60 = vmul.f32 -0.5, %v3144_v2  ;;  %v1671_v8 = vand.u32 2147483647, %v3144_v2  ;;  %v1625_v43 = vmul.f32 %v3142_v20, %v1624_v44 }
 0x333   : > { %v3148_v25 = vpop.eup %3147  ;;  %v1647_v11 = vadd.f32 1.0, %v3146_v45  ;;  %v1650_v12 = vmul.f32 -0.5, %v3146_v45  ;;  %v1653_v28 = vand.u32 2147483647, %v3146_v45 }
 0x334   : > { %v4110_v4 = vpop.eup %3149  ;;  %3159 = vlog2.f32 %v1665_v41  ;;  %v1674_v46 = vadd.f32 1.0, %v3148_v25  ;;  %v1669_v49 = vadd.f32 1.0, %v1668_v60  ;;  %v1677_v50 = vmul.f32 -0.5, %v3148_v25 }
 0x335   : > { %3161 = vlog2.f32 %v1647_v11  ;;  %v1651_v3 = vadd.f32 1.0, %v1650_v12  ;;  %v1656_v31 = vadd.f32 1.0, %v4110_v4  ;;  %v1680_v59 = vand.u32 2147483647, %v3148_v25 }
 0x336   : > { %v3152_v14 = vpop.eup %3151  ;;  %3163 = vlog2.f32 %v1674_v46  ;;  %v2902_v13 = vpop.f32.mrb[20].mxu0  ;;  %vm4117_vm15 = vcmp.lt.f32.partialorder %v1671_v8, 0.0004427343  ;;  %v1670_v7 = vmul.f32 %v3144_v2, %v1669_v49  ;;  %vm4123_vm0 = vcmp.lt.f32.partialorder %v1653_v28, 0.0004427343 }
 0x337   : > { %v3154_v56 = vpop.eup %3153  ;;  %v1631_v32 = vmul.f32 0.6931472, %v3152_v14  ;;  %3165 = vlog2.f32 %v1656_v31  ;;  %v1480_v39 = vpop.f32.mrb[21].mxu0  ;;  %v1652_v62 = vmul.f32 %v3146_v45, %v1651_v3  ;;  %v1678_v5 = vadd.f32 1.0, %v1677_v50 }
 0x338   : > { %v3156_v23 = vpop.eup %3155  ;;  %v1613_v16 = vmul.f32 0.6931472, %v3154_v56  ;;  %v1659_v20 = vmul.f32 -0.5, %v4110_v4  ;;  %v4129_v22 = vadd.f32 %v2902_v13, %v4028_v17  ;;  %v2903_v47 = vpop.f32.mrb[22].mxu0  ;;  %vm4135_vm2 = vcmp.lt.f32.partialorder %v1680_v59, 0.0004427343 }
 0x339   : > { %v1637_v52 = vsel %vm4097_vm11, %v1634_v61, %v1631_v32  ;;  %v1640_v42 = vmul.f32 0.6931472, %v3156_v23  ;;  %v3158_v18 = vpop.eup %3157  ;;  %v1483_v61 = vpop.f32.mrb[23].mxu0  ;;  %v4145_v10 = vadd.f32 %v4028_v17, %v1480_v39  ;;  %v1662_v37 = vand.u32 2147483647, %v4110_v4 }
 0x33a   : > { %v1619_v57 = vsel %vm4102_vm12, %v1616_v53, %v1613_v16  ;;  %v1622_v6 = vmul.f32 0.6931472, %v3158_v18  ;;  %v1725_v45 = vadd.f32 %v1637_v52, %v1501_v63  ;;  %v1525_v60 = vand.u32 2147483647, %v4129_v22 }
 0x33b   : > { %v1646_v2 = vsel %vm4106_vm13, %v1643_v19, %v1640_v42  ;;  %v4151_v11 = vadd.f32 %v2903_v47, %v4028_v17  ;;  %v4154_v12 = vadd.f32 %v4028_v17, %v1483_v61  ;;  %v1723_v29 = vadd.f32 %v1619_v57, %v1499_v21 }
 0x33c   : > { %v1726_v41 = vadd.f32 %v1646_v2, %v1502_v30  ;;  %v1628_v9 = vsel %vm4112_vm14, %v1625_v43, %v1622_v6  ;;  %v1541_v44 = vsub.f32 0.0, %v1525_v60  ;;  %v1679_v40 = vmul.f32 %v3148_v25, %v1678_v5 }
 0x33d   : > { %v1724_v30 = vadd.f32 %v1628_v9, %v1500_v38  ;;  %v1660_v49 = vadd.f32 1.0, %v1659_v20  ;;  %v1523_v28 = vand.u32 2147483647, %v4145_v10  ;;  %v1526_v31 = vand.u32 2147483647, %v4151_v11 }
 0x33e   : > { %v3160_v26 = vpop.eup %3159  ;;  %v1738_v63 = vpack.c.bf16 %v1726_v41, %v1725_v45  ;;  %v1571_v17 = vmul.f32 1.442695, %v1541_v44  ;;  %v1524_v33 = vand.u32 2147483647, %v4154_v12  ;;  %vm4167_vm3 = vcmp.lt.f32.partialorder %v1662_v37, 0.0004427343 }
 0x33f   : > { %v3162_v8 = vpop.eup %3161  ;;  %v1667_v46 = vmul.f32 0.6931472, %v3160_v26  ;;  %v1737_v3 = vpack.c.bf16 %v1724_v30, %v1723_v29  ;;  %v1539_v56 = vsub.f32 0.0, %v1523_v28  ;;  %v1542_v53 = vsub.f32 0.0, %v1526_v31 }
 0x340   : > { %v3164_v14 = vpop.eup %3163  ;;  %v1649_v50 = vmul.f32 0.6931472, %v3162_v8  ;;  %3167 = vpow2.f32 %v1571_v17  ;;  %v1661_v13 = vmul.f32 %v4110_v4, %v1660_v49  ;;  %v1540_v52 = vsub.f32 0.0, %v1524_v33 }
 0x341   : > { %v1673_v58 = vsel %vm4117_vm15, %v1670_v7, %v1667_v46  ;;  %v1676_v21 = vmul.f32 0.6931472, %v3164_v14  ;;  %v3166_v38 = vpop.eup %3165  ;;  %2916 = vmatprep.mubr.msk.bf16.mxu1 %vm537_vm1, %v1737_v3  ;;  %v1567_v23 = vmul.f32 1.442695, %v1539_v56  ;;  %v1573_v54 = vmul.f32 1.442695, %v1542_v53 }
 0x342   : > { %v1655_v25 = vsel %vm4123_vm0, %v1652_v62, %v1649_v50  ;;  %v1658_v59 = vmul.f32 0.6931472, %v3166_v38  ;;  %2917 = vmatmul.mubr.msk.bf16.gmra.mrb[28].mxu1 %vm537_vm1, %v1738_v63  ;;  %v1729_v16 = vadd.f32 %v1673_v58, %v1505_v0  ;;  %v1569_v39 = vmul.f32 1.442695, %v1540_v52 }
 0x343   : > { %v1682_v19 = vsel %vm4135_vm2, %v1679_v40, %v1676_v21  ;;  %v1727_v42 = vadd.f32 %v1655_v25, %v1503_v55  ;;  %3169 = vpow2.f32 %v1567_v23  ;;  %v1509_v37 = vmax.f32 %v4129_v22, 0.0 }
 0x344   : > { %v1730_v43 = vadd.f32 %v1682_v19, %v1506_v35  ;;  %v1664_v7 = vsel %vm4167_vm3, %v1661_v13, %v1658_v59  ;;  %3171 = vpow2.f32 %v1573_v54  ;;  %v1507_v3 = vmax.f32 %v4145_v10, 0.0  ;;  %v2987_v10 = vld [vmem:[%s4596_s10] sm:$0xff]   ;;  %v2990_v59 = vld [vmem:[%s4596_s10 + $0x18] sm:$0xff]  }
 0x345   : > { %v1728_v4 = vadd.f32 %v1664_v7, %v1504_v15  ;;  %3173 = vpow2.f32 %v1569_v39  ;;  %v1510_v22 = vmax.f32 %v4151_v11, 0.0  ;;  %v1508_v33 = vmax.f32 %v4154_v12, 0.0  ;;  %2928 = vmatprep.subr.bf16.mxu0 %v2987_v10  ;;  %v2988_v11 = vld [vmem:[%s4596_s10 + $0x8] sm:$0xff]   ;;  %v2989_v12 = vld [vmem:[%s4596_s10 + $0x10] sm:$0xff]   ;;  %v4215_v13 = vld [vmem:[%s4595_s9] ss:$0 sm:$0xff] }
 0x346   : > { %v1740_v27 = vpack.c.bf16 %v1730_v43, %v1729_v16  ;;  %2929 = vmatpush3.bf16.msra.mxu0 %v2987_v10 }
 0x347   : > { %v1739_v36 = vpack.c.bf16 %v1728_v4, %v1727_v42  ;;  %2930 = vmatprep.subr.bf16.mxu0 %v2988_v11 }
 0x349   : > { %2920 = vmatprep.mubr.msk.bf16.mxu1 %vm537_vm1, %v1739_v36 }
 0x34a   : > { %2921 = vmatmul.mubr.msk.bf16.gmra.mrb[32].mxu1 %vm537_vm1, %v1740_v27  ;;  %v3168_v48 = vpop.eup %3167  ;;  %2931 = vmatpush3.bf16.msra.mxu0 %v2988_v11 }
 0x34b   : > { %v1701_v0 = vadd.f32 1.0, %v3168_v48  ;;  %v1704_v15 = vmul.f32 -0.5, %v3168_v48  ;;  %v1707_v6 = vand.u32 2147483647, %v3168_v48  ;;  %2932 = vmatprep.subr.bf16.mxu0 %v2989_v12 }
 0x34d   : > { %v3170_v51 = vpop.eup %3169  ;;  %3175 = vlog2.f32 %v1701_v0  ;;  %v1705_v47 = vadd.f32 1.0, %v1704_v15  ;;  %vm4189_vm4 = vcmp.lt.f32.partialorder %v1707_v6, 0.0004427343 }
 0x34e   : > { %v3172_v55 = vpop.eup %3171  ;;  %v1683_v35 = vadd.f32 1.0, %v3170_v51  ;;  %v1686_v5 = vmul.f32 -0.5, %v3170_v51  ;;  %v1689_v41 = vand.u32 2147483647, %v3170_v51  ;;  %2933 = vmatpush3.bf16.msra.mxu0 %v2989_v12 }
 0x34f   : > { %v1710_v18 = vadd.f32 1.0, %v3172_v55  ;;  %v3174_v62 = vpop.eup %3173  ;;  %v1713_v20 = vmul.f32 -0.5, %v3172_v55  ;;  %v1716_v60 = vand.u32 2147483647, %v3172_v55  ;;  %v1706_v26 = vmul.f32 %v3168_v48, %v1705_v47  ;;  %2934 = vmatprep.subr.bf16.mxu0 %v2990_v59 }
 0x350   : > { %3177 = vlog2.f32 %v1683_v35  ;;  %v1692_v34 = vadd.f32 1.0, %v3174_v62  ;;  %v1695_v57 = vmul.f32 -0.5, %v3174_v62  ;;  %v1687_v61 = vadd.f32 1.0, %v1686_v5 }
 0x351   : > { %3179 = vlog2.f32 %v1710_v18  ;;  %v1714_v45 = vadd.f32 1.0, %v1713_v20  ;;  %v1698_v8 = vand.u32 2147483647, %v3174_v62  ;;  %vm1690_vm5 = vcmp.lt.f32.partialorder %v1689_v41, 0.0004427343 }
 0x352   : > { %3181 = vlog2.f32 %v1692_v34  ;;  %v1696_v29 = vadd.f32 1.0, %v1695_v57  ;;  %v1688_v40 = vmul.f32 %v3170_v51, %v1687_v61  ;;  %vm1717_vm6 = vcmp.lt.f32.partialorder %v1716_v60, 0.0004427343  ;;  %2935 = vmatpush3.bf16.msra.mxu0 %v2990_v59 }
 0x353   : > { %v1715_v28 = vmul.f32 %v3172_v55, %v1714_v45  ;;  %vm1699_vm7 = vcmp.lt.f32.partialorder %v1698_v8, 0.0004427343 }
 0x354   : > { %v1697_v58 = vmul.f32 %v3174_v62, %v1696_v29 }
 0x357   : > { %v3176_v2 = vpop.eup %3175 }
 0x358   : > { %v1703_v1 = vmul.f32 0.6931472, %v3176_v2 }
 0x35a   : > { %v3178_v9 = vpop.eup %3177  ;;  %v1709_v46 = vsel %vm4189_vm4, %v1706_v26, %v1703_v1 }
 0x35b   : > { %v3180_v63 = vpop.eup %3179  ;;  %v1685_v44 = vmul.f32 0.6931472, %v3178_v9  ;;  %v1733_v21 = vadd.f32 %v1709_v46, %v1509_v37 }
 0x35c   : > { %v1712_v49 = vmul.f32 0.6931472, %v3180_v63  ;;  %v3182_v14 = vpop.eup %3181 }
 0x35d   : > { %v1691_v50 = vsel %vm1690_vm5, %v1688_v40, %v1685_v44  ;;  %v1694_v31 = vmul.f32 0.6931472, %v3182_v14 }
 0x35e   : > { %v1718_v17 = vsel %vm1717_vm6, %v1715_v28, %v1712_v49  ;;  %v1731_v25 = vadd.f32 %v1691_v50, %v1507_v3 }
 0x35f   : > { %v1734_v56 = vadd.f32 %v1718_v17, %v1510_v22  ;;  %v1700_v38 = vsel %vm1699_vm7, %v1697_v58, %v1694_v31 }
 0x360   : > { %v1732_v53 = vadd.f32 %v1700_v38, %v1508_v33 }
 0x361   : > { %v1742_v32 = vpack.c.bf16 %v1734_v56, %v1733_v21 }
 0x362   : > { %v1741_v19 = vpack.c.bf16 %v1732_v53, %v1731_v25 }
 0x364   : > { %2924 = vmatprep.mubr.msk.bf16.mxu1 %vm537_vm1, %v1741_v19 }
 0x365   : > { %2925 = vmatmul.mubr.msk.bf16.gmra.mrb[36].mxu1 %vm537_vm1, %v1742_v32 }
 0x3f2   : > { %v2914_v23 = vpop.f32.mrb[24].mxu1 }
 0x3f3   : > { %v4218_v16 = vadd.f32 %v2914_v23, %v4215_v13  ;;  %v1840_v43 = vpop.f32.mrb[25].mxu1 }
 0x3f4   : > { %v4221_v54 = vadd.f32 %v4215_v13, %v1840_v43  ;;  %v2915_v52 = vpop.f32.mrb[26].mxu1 }
 0x3f5   : > { %v1921_v42 = vand.u32 2147483647, %v4218_v16  ;;  %v4225_v7 = vadd.f32 %v2915_v52, %v4215_v13  ;;  %v1843_v27 = vpop.f32.mrb[27].mxu1  ;;  %v1905_v40 = vmax.f32 %v4218_v16, 0.0 }
 0x3f6   : > { %v1919_v4 = vand.u32 2147483647, %v4221_v54  ;;  %v4229_v39 = vadd.f32 %v4215_v13, %v1843_v27  ;;  %v1903_v38 = vmax.f32 %v4221_v54, 0.0 }
 0x3f7   : > { %v1937_v36 = vsub.f32 0.0, %v1921_v42  ;;  %v1922_v48 = vand.u32 2147483647, %v4225_v7  ;;  %v1906_v25 = vmax.f32 %v4225_v7, 0.0 }
 0x3f8   : > { %v1935_v0 = vsub.f32 0.0, %v1919_v4  ;;  %v1920_v51 = vand.u32 2147483647, %v4229_v39  ;;  %v1904_v59 = vmax.f32 %v4229_v39, 0.0 }
 0x3f9   : > { %v1955_v55 = vmul.f32 1.442695, %v1937_v36  ;;  %v1938_v35 = vsub.f32 0.0, %v1922_v48 }
 0x3fa   : > { %v1951_v18 = vmul.f32 1.442695, %v1935_v0  ;;  %v1936_v62 = vsub.f32 0.0, %v1920_v51 }
 0x3fb   : > { %3183 = vpow2.f32 %v1955_v55  ;;  %v1957_v34 = vmul.f32 1.442695, %v1938_v35 }
 0x3fc   : > { %3185 = vpow2.f32 %v1951_v18  ;;  %v1953_v15 = vmul.f32 1.442695, %v1936_v62 }
 0x3fd   : > { %3187 = vpow2.f32 %v1957_v34 }
 0x3fe   : > { %3189 = vpow2.f32 %v1953_v15 }
 0x405   : > { %v3184_v5 = vpop.eup %3183 }
 0x406   : > { %v3186_v20 = vpop.eup %3185  ;;  %v2001_v47 = vadd.f32 1.0, %v3184_v5  ;;  %v2004_v45 = vmul.f32 -0.5, %v3184_v5  ;;  %v2007_v26 = vand.u32 2147483647, %v3184_v5 }
 0x407   : > { %v3188_v57 = vpop.eup %3187  ;;  %v1983_v2 = vadd.f32 1.0, %v3186_v20  ;;  %v1986_v41 = vmul.f32 -0.5, %v3186_v20  ;;  %v1989_v44 = vand.u32 2147483647, %v3186_v20 }
 0x408   : > { %v3190_v6 = vpop.eup %3189  ;;  %3191 = vlog2.f32 %v2001_v47  ;;  %v2010_v1 = vadd.f32 1.0, %v3188_v57  ;;  %v2013_v60 = vmul.f32 -0.5, %v3188_v57  ;;  %v2005_v9 = vadd.f32 1.0, %v2004_v45 }
 0x409   : > { %3193 = vlog2.f32 %v1983_v2  ;;  %v1992_v61 = vadd.f32 1.0, %v3190_v6  ;;  %v1995_v37 = vmul.f32 -0.5, %v3190_v6  ;;  %v1987_v29 = vadd.f32 1.0, %v1986_v41 }
 0x40a   : > { %3195 = vlog2.f32 %v2010_v1  ;;  %v2014_v63 = vadd.f32 1.0, %v2013_v60  ;;  %v2016_v8 = vand.u32 2147483647, %v3188_v57  ;;  %v2006_v28 = vmul.f32 %v3184_v5, %v2005_v9 }
 0x40b   : > { %3197 = vlog2.f32 %v1992_v61  ;;  %v1996_v14 = vadd.f32 1.0, %v1995_v37  ;;  %vm4234_vm8 = vcmp.lt.f32.partialorder %v2007_v26, 0.0004427343  ;;  %v1998_v17 = vand.u32 2147483647, %v3190_v6 }
 0x40c   : > { %v1988_v58 = vmul.f32 %v3186_v20, %v1987_v29  ;;  %v2015_v56 = vmul.f32 %v3188_v57, %v2014_v63  ;;  %vm1990_vm9 = vcmp.lt.f32.partialorder %v1989_v44, 0.0004427343  ;;  %vm2017_vm10 = vcmp.lt.f32.partialorder %v2016_v8, 0.0004427343 }
 0x40d   : > { %v1997_v10 = vmul.f32 %v3190_v6, %v1996_v14  ;;  %vm1999_vm11 = vcmp.lt.f32.partialorder %v1998_v17, 0.0004427343 }
 0x412   : > { %v3192_v30 = vpop.eup %3191 }
 0x413   : > { %v3194_v46 = vpop.eup %3193  ;;  %v2003_v49 = vmul.f32 0.6931472, %v3192_v30 }
 0x414   : > { %v3196_v3 = vpop.eup %3195  ;;  %v1985_v50 = vmul.f32 0.6931472, %v3194_v46 }
 0x415   : > { %v2009_v31 = vsel %vm4234_vm8, %v2006_v28, %v2003_v49  ;;  %v2012_v21 = vmul.f32 0.6931472, %v3196_v3  ;;  %v3198_v33 = vpop.eup %3197  ;;  %v2918_v23 = vpop.f32.mrb[28].mxu1 }
 0x416   : > { %v1991_v32 = vsel %vm1990_vm9, %v1988_v58, %v1985_v50  ;;  %v1994_v19 = vmul.f32 0.6931472, %v3198_v33  ;;  %v2129_v11 = vadd.f32 %v2009_v31, %v1905_v40  ;;  %v4244_v43 = vadd.f32 %v2918_v23, %v4215_v13  ;;  %v1856_v52 = vpop.f32.mrb[29].mxu1 }
 0x417   : > { %v2018_v53 = vsel %vm2017_vm10, %v2015_v56, %v2012_v21  ;;  %v2127_v54 = vadd.f32 %v1991_v32, %v1903_v38  ;;  %v4247_v7 = vadd.f32 %v4215_v13, %v1856_v52  ;;  %v2919_v4 = vpop.f32.mrb[30].mxu1 }
 0x418   : > { %v2130_v12 = vadd.f32 %v2018_v53, %v1906_v25  ;;  %v2000_v16 = vsel %vm1999_vm11, %v1997_v10, %v1994_v19  ;;  %v1925_v36 = vand.u32 2147483647, %v4244_v43  ;;  %v4251_v48 = vadd.f32 %v2919_v4, %v4215_v13  ;;  %v1859_v39 = vpop.f32.mrb[31].mxu1 }
 0x419   : > { %v2128_v27 = vadd.f32 %v2000_v16, %v1904_v59  ;;  %v1923_v51 = vand.u32 2147483647, %v4247_v7  ;;  %v4255_v55 = vadd.f32 %v4215_v13, %v1859_v39  ;;  %v1909_v38 = vmax.f32 %v4244_v43, 0.0 }
 0x41a   : > { %v2144_v42 = vpack.c.bf16 %v2130_v12, %v2129_v11  ;;  %v1941_v35 = vsub.f32 0.0, %v1925_v36  ;;  %v1926_v18 = vand.u32 2147483647, %v4251_v48  ;;  %v1907_v10 = vmax.f32 %v4247_v7, 0.0 }
 0x41b   : > { %v2143_v0 = vpack.c.bf16 %v2128_v27, %v2127_v54  ;;  %v1939_v62 = vsub.f32 0.0, %v1923_v51  ;;  %v1924_v34 = vand.u32 2147483647, %v4255_v55  ;;  %v1910_v11 = vmax.f32 %v4251_v48, 0.0 }
 0x41c   : > { %v1963_v15 = vmul.f32 1.442695, %v1941_v35  ;;  %v1942_v5 = vsub.f32 0.0, %v1926_v18  ;;  %v1908_v59 = vmax.f32 %v4255_v55, 0.0 }
 0x41d   : > { %2936 = vmatprep.mubr.msk.bf16.mxu0 %vm537_vm1, %v2143_v0  ;;  %v1959_v20 = vmul.f32 1.442695, %v1939_v62  ;;  %v1940_v47 = vsub.f32 0.0, %v1924_v34  ;;  %v2922_v57 = vpop.f32.mrb[32].mxu1 }
 0x41e   : > { %2937 = vmatmul.mubr.msk.bf16.vlgmr.msra.gmra.mrb[24].mxu0 %vm537_vm1, %v2144_v42  ;;  %3199 = vpow2.f32 %v1963_v15  ;;  %v1965_v2 = vmul.f32 1.442695, %v1942_v5  ;;  %v4262_v6 = vadd.f32 %v2922_v57, %v4215_v13  ;;  %v1872_v1 = vpop.f32.mrb[33].mxu1 }
 0x41f   : > { %3201 = vpow2.f32 %v1959_v20  ;;  %v1961_v61 = vmul.f32 1.442695, %v1940_v47  ;;  %v4265_v45 = vadd.f32 %v4215_v13, %v1872_v1  ;;  %v2923_v41 = vpop.f32.mrb[34].mxu1 }
 0x420   : > { %3203 = vpow2.f32 %v1965_v2  ;;  %v1929_v60 = vand.u32 2147483647, %v4262_v6  ;;  %v4269_v9 = vadd.f32 %v2923_v41, %v4215_v13  ;;  %v1875_v37 = vpop.f32.mrb[35].mxu1  ;;  %v1913_v16 = vmax.f32 %v4262_v6, 0.0 }
 0x421   : > { %3205 = vpow2.f32 %v1961_v61  ;;  %v1927_v26 = vand.u32 2147483647, %v4265_v45  ;;  %v4273_v29 = vadd.f32 %v4215_v13, %v1875_v37  ;;  %v1911_v52 = vmax.f32 %v4265_v45, 0.0 }
 0x422   : > { %v1945_v63 = vsub.f32 0.0, %v1929_v60  ;;  %v1930_v30 = vand.u32 2147483647, %v4269_v9  ;;  %v1914_v4 = vmax.f32 %v4269_v9, 0.0 }
 0x423   : > { %v1943_v44 = vsub.f32 0.0, %v1927_v26  ;;  %v1928_v8 = vand.u32 2147483647, %v4273_v29  ;;  %v1912_v36 = vmax.f32 %v4273_v29, 0.0 }
 0x424   : > { %v1971_v46 = vmul.f32 1.442695, %v1945_v63  ;;  %v1946_v40 = vsub.f32 0.0, %v1930_v30 }
 0x425   : > { %v1967_v49 = vmul.f32 1.442695, %v1943_v44  ;;  %v1944_v28 = vsub.f32 0.0, %v1928_v8 }
 0x426   : > { %3207 = vpow2.f32 %v1971_v46  ;;  %v1973_v14 = vmul.f32 1.442695, %v1946_v40 }
 0x427   : > { %3209 = vpow2.f32 %v1967_v49  ;;  %v1969_v3 = vmul.f32 1.442695, %v1944_v28 }
 0x428   : > { %v3200_v22 = vpop.eup %3199  ;;  %3211 = vpow2.f32 %v1973_v14 }
 0x429   : > { %v3202_v50 = vpop.eup %3201  ;;  %v2037_v17 = vadd.f32 1.0, %v3200_v22  ;;  %3213 = vpow2.f32 %v1969_v3  ;;  %v2040_v56 = vmul.f32 -0.5, %v3200_v22  ;;  %v2043_v32 = vand.u32 2147483647, %v3200_v22 }
 0x42a   : > { %v3204_v31 = vpop.eup %3203  ;;  %v2019_v58 = vadd.f32 1.0, %v3202_v50  ;;  %v2022_v25 = vmul.f32 -0.5, %v3202_v50  ;;  %v2025_v53 = vand.u32 2147483647, %v3202_v50 }
 0x42b   : > { %v3206_v21 = vpop.eup %3205  ;;  %3215 = vlog2.f32 %v2037_v17  ;;  %v2046_v33 = vadd.f32 1.0, %v3204_v31  ;;  %v2049_v12 = vmul.f32 -0.5, %v3204_v31  ;;  %v2041_v23 = vadd.f32 1.0, %v2040_v56 }
 0x42c   : > { %3217 = vlog2.f32 %v2019_v58  ;;  %v2028_v19 = vadd.f32 1.0, %v3206_v21  ;;  %v2023_v42 = vadd.f32 1.0, %v2022_v25  ;;  %v2031_v27 = vmul.f32 -0.5, %v3206_v21 }
 0x42d   : > { %3219 = vlog2.f32 %v2046_v33  ;;  %vm4285_vm12 = vcmp.lt.f32.partialorder %v2043_v32, 0.0004427343  ;;  %vm4289_vm13 = vcmp.lt.f32.partialorder %v2025_v53, 0.0004427343  ;;  %v2050_v62 = vadd.f32 1.0, %v2049_v12 }
 0x42e   : > { %3221 = vlog2.f32 %v2028_v19  ;;  %v2052_v34 = vand.u32 2147483647, %v3204_v31  ;;  %v2042_v47 = vmul.f32 %v3200_v22, %v2041_v23  ;;  %v2034_v57 = vand.u32 2147483647, %v3206_v21 }
 0x42f   : > { %v2024_v1 = vmul.f32 %v3202_v50, %v2023_v42  ;;  %v2032_v61 = vadd.f32 1.0, %v2031_v27  ;;  %v2051_v8 = vmul.f32 %v3204_v31, %v2050_v62 }
 0x430   : > { %v3208_v54 = vpop.eup %3207  ;;  %vm4299_vm14 = vcmp.lt.f32.partialorder %v2052_v34, 0.0004427343  ;;  %vm4303_vm15 = vcmp.lt.f32.partialorder %v2034_v57, 0.0004427343 }
 0x431   : > { %v3210_v39 = vpop.eup %3209  ;;  %v2073_v51 = vadd.f32 1.0, %v3208_v54  ;;  %v2076_v35 = vmul.f32 -0.5, %v3208_v54  ;;  %v2079_v41 = vand.u32 2147483647, %v3208_v54  ;;  %v2033_v17 = vmul.f32 %v3206_v21, %v2032_v61 }
 0x432   : > { %v4293_v18 = vpop.eup %3211  ;;  %v2055_v15 = vadd.f32 1.0, %v3210_v39  ;;  %v2058_v5 = vmul.f32 -0.5, %v3210_v39  ;;  %v2061_v26 = vand.u32 2147483647, %v3210_v39 }
 0x433   : > { %v4295_v20 = vpop.eup %3213  ;;  %3223 = vlog2.f32 %v2073_v51  ;;  %v2082_v2 = vadd.f32 1.0, %v4293_v18  ;;  %v2077_v37 = vadd.f32 1.0, %v2076_v35  ;;  %v2085_v3 = vmul.f32 -0.5, %v4293_v18 }
 0x434   : > { %3225 = vlog2.f32 %v2055_v15  ;;  %v2064_v63 = vadd.f32 1.0, %v4295_v20  ;;  %v2059_v40 = vadd.f32 1.0, %v2058_v5  ;;  %v2067_v31 = vmul.f32 -0.5, %v4295_v20 }
 0x435   : > { %v3216_v60 = vpop.eup %3215  ;;  %3227 = vlog2.f32 %v2082_v2  ;;  %v2078_v56 = vmul.f32 %v3208_v54, %v2077_v37  ;;  %vm4311_vm0 = vcmp.lt.f32.partialorder %v2079_v41, 0.0004427343  ;;  %vm4315_vm2 = vcmp.lt.f32.partialorder %v2061_v26, 0.0004427343 }
 0x436   : > { %v3218_v30 = vpop.eup %3217  ;;  %v2039_v44 = vmul.f32 0.6931472, %v3216_v60  ;;  %3229 = vlog2.f32 %v2064_v63  ;;  %v2088_v32 = vand.u32 2147483647, %v4293_v18  ;;  %v2060_v12 = vmul.f32 %v3210_v39, %v2059_v40 }
 0x437   : > { %v3220_v49 = vpop.eup %3219  ;;  %v2021_v28 = vmul.f32 0.6931472, %v3218_v30  ;;  %v2086_v27 = vadd.f32 1.0, %v2085_v3  ;;  %v2068_v48 = vadd.f32 1.0, %v2067_v31  ;;  %v2070_v62 = vand.u32 2147483647, %v4295_v20 }
 0x438   : > { %v2045_v22 = vsel %vm4285_vm12, %v2042_v47, %v2039_v44  ;;  %v2048_v50 = vmul.f32 0.6931472, %v3220_v49  ;;  %v3222_v58 = vpop.eup %3221  ;;  %v2926_v23 = vpop.f32.mrb[36].mxu1  ;;  %vm4340_vm3 = vcmp.lt.f32.partialorder %v2088_v32, 0.0004427343  ;;  %vm2551_vm12 = vcmask 7168  }
 0x439   : > { %v2027_v53 = vsel %vm4289_vm13, %v2024_v1, %v2021_v28  ;;  %v2030_v19 = vmul.f32 0.6931472, %v3222_v58  ;;  %v2133_v54 = vadd.f32 %v2045_v22, %v1909_v38  ;;  %v4327_v0 = vadd.f32 %v2926_v23, %v4215_v13  ;;  %v1888_v51 = vpop.f32.mrb[37].mxu1 }
 0x43a   : > { %v2054_v21 = vsel %vm4299_vm14, %v2051_v8, %v2048_v50  ;;  %v4333_v34 = vadd.f32 %v4215_v13, %v1888_v51  ;;  %v2927_v39 = vpop.f32.mrb[38].mxu1  ;;  %v2131_v43 = vadd.f32 %v2027_v53, %v1907_v10  ;;  %v2087_v55 = vmul.f32 %v4293_v18, %v2086_v27 }
 0x43b   : > { %v2134_v42 = vadd.f32 %v2054_v21, %v1910_v11  ;;  %v2036_v35 = vsel %vm4303_vm15, %v2033_v17, %v2030_v19  ;;  %v1933_v5 = vand.u32 2147483647, %v4327_v0  ;;  %v1891_v47 = vpop.f32.mrb[39].mxu1  ;;  %v4346_v41 = vadd.f32 %v2927_v39, %v4215_v13 }
 0x43c   : > { %v2132_v11 = vadd.f32 %v2036_v35, %v1908_v59  ;;  %v1931_v61 = vand.u32 2147483647, %v4333_v34  ;;  %v4352_v30 = vadd.f32 %v4215_v13, %v1891_v47  ;;  %v2069_v8 = vmul.f32 %v4295_v20, %v2068_v48 }
 0x43d   : > { %v3224_v15 = vpop.eup %3223  ;;  %v2146_v38 = vpack.c.bf16 %v2134_v42, %v2133_v54  ;;  %v1949_v59 = vsub.f32 0.0, %v1933_v5  ;;  %vm4355_vm4 = vcmp.lt.f32.partialorder %v2070_v62, 0.0004427343  ;;  %v1934_v49 = vand.u32 2147483647, %v4346_v41 }
 0x43e   : > { %v3226_v57 = vpop.eup %3225  ;;  %v2075_v2 = vmul.f32 0.6931472, %v3224_v15  ;;  %v2145_v10 = vpack.c.bf16 %v2132_v11, %v2131_v43  ;;  %v1947_v63 = vsub.f32 0.0, %v1931_v61  ;;  %v1932_v17 = vand.u32 2147483647, %v4352_v30 }
 0x43f   : > { %v3228_v7 = vpop.eup %3227  ;;  %v2057_v60 = vmul.f32 0.6931472, %v3226_v57  ;;  %v1979_v40 = vmul.f32 1.442695, %v1949_v59  ;;  %v1950_v22 = vsub.f32 0.0, %v1934_v49  ;;  %v1917_v61 = vmax.f32 %v4327_v0, 0.0 }
 0x440   : > { %v2081_v37 = vsel %vm4311_vm0, %v2078_v56, %v2075_v2  ;;  %v2084_v26 = vmul.f32 0.6931472, %v3228_v7  ;;  %v3230_v44 = vpop.eup %3229  ;;  %2940 = vmatprep.mubr.msk.bf16.mxu0 %vm537_vm1, %v2145_v10  ;;  %v1975_v14 = vmul.f32 1.442695, %v1947_v63  ;;  %v1918_v10 = vmax.f32 %v4346_v41, 0.0 }
 0x441   : > { %v2063_v18 = vsel %vm4315_vm2, %v2060_v12, %v2057_v60  ;;  %v2066_v13 = vmul.f32 0.6931472, %v3230_v44  ;;  %2941 = vmatmul.mubr.msk.bf16.gmra.mrb[28].mxu0 %vm537_vm1, %v2146_v38  ;;  %v2137_v20 = vadd.f32 %v2081_v37, %v1913_v16  ;;  %3231 = vpow2.f32 %v1979_v40  ;;  %v4385_v41 = vld [vmem:[#allocation2] ss:$0 sm:$0xff] }
 0x442   : > { %v2090_v28 = vsel %vm4340_vm3, %v2087_v55, %v2084_v26  ;;  %3233 = vpow2.f32 %v1975_v14  ;;  %v2135_v31 = vadd.f32 %v2063_v18, %v1911_v52  ;;  %v1981_v6 = vmul.f32 1.442695, %v1950_v22 }
 0x443   : > { %v2138_v3 = vadd.f32 %v2090_v28, %v1914_v4  ;;  %v2072_v50 = vsel %vm4355_vm4, %v2069_v8, %v2066_v13  ;;  %v1948_v16 = vsub.f32 0.0, %v1932_v17  ;;  %v1915_v8 = vmax.f32 %v4333_v34, 0.0 }
 0x444   : > { %v2136_v56 = vadd.f32 %v2072_v50, %v1912_v36  ;;  %3235 = vpow2.f32 %v1981_v6  ;;  %v1916_v46 = vmax.f32 %v4352_v30, 0.0 }
 0x445   : > { %v2148_v58 = vpack.c.bf16 %v2138_v3, %v2137_v20  ;;  %v1977_v9 = vmul.f32 1.442695, %v1948_v16 }
 0x446   : > { %v2147_v33 = vpack.c.bf16 %v2136_v56, %v2135_v31 }
 0x447   : > { %3237 = vpow2.f32 %v1977_v9 }
 0x448   : > { %2944 = vmatprep.mubr.msk.bf16.mxu0 %vm537_vm1, %v2147_v33 }
 0x449   : > { %2945 = vmatmul.mubr.msk.bf16.gmra.mrb[32].mxu0 %vm537_vm1, %v2148_v58 }
 0x44b   : > { %v3232_v4 = vpop.eup %3231 }
 0x44c   : > { %v3234_v25 = vpop.eup %3233  ;;  %v2109_v32 = vadd.f32 1.0, %v3232_v4  ;;  %v2112_v36 = vmul.f32 -0.5, %v3232_v4  ;;  %v2115_v27 = vand.u32 2147483647, %v3232_v4 }
 0x44d   : > { %v2091_v53 = vadd.f32 1.0, %v3234_v25  ;;  %v2094_v12 = vmul.f32 -0.5, %v3234_v25  ;;  %v2097_v43 = vand.u32 2147483647, %v3234_v25 }
 0x44e   : > { %3239 = vlog2.f32 %v2109_v32  ;;  %v3236_v45 = vpop.eup %3235  ;;  %v2113_v23 = vadd.f32 1.0, %v2112_v36  ;;  %vm2116_vm5 = vcmp.lt.f32.partialorder %v2115_v27, 0.0004427343 }
 0x44f   : > { %3241 = vlog2.f32 %v2091_v53  ;;  %v2118_v52 = vadd.f32 1.0, %v3236_v45  ;;  %v2121_v19 = vmul.f32 -0.5, %v3236_v45  ;;  %v2095_v62 = vadd.f32 1.0, %v2094_v12 }
 0x450   : > { %v2124_v39 = vand.u32 2147483647, %v3236_v45  ;;  %v2114_v15 = vmul.f32 %v3232_v4, %v2113_v23  ;;  %vm2098_vm7 = vcmp.lt.f32.partialorder %v2097_v43, 0.0004427343 }
 0x451   : > { %v3238_v29 = vpop.eup %3237  ;;  %3243 = vlog2.f32 %v2118_v52  ;;  %v2122_v48 = vadd.f32 1.0, %v2121_v19  ;;  %v2096_v7 = vmul.f32 %v3234_v25, %v2095_v62 }
 0x452   : > { %v2100_v21 = vadd.f32 1.0, %v3238_v29  ;;  %v2103_v54 = vmul.f32 -0.5, %v3238_v29  ;;  %v2106_v1 = vand.u32 2147483647, %v3238_v29  ;;  %vm2125_vm6 = vcmp.lt.f32.partialorder %v2124_v39, 0.0004427343 }
 0x453   : > { %v2123_v2 = vmul.f32 %v3236_v45, %v2122_v48 }
 0x454   : > { %3245 = vlog2.f32 %v2100_v21  ;;  %v2104_v38 = vadd.f32 1.0, %v2103_v54  ;;  %vm2107_vm8 = vcmp.lt.f32.partialorder %v2106_v1, 0.0004427343 }
 0x456   : > { %v2105_v59 = vmul.f32 %v3238_v29, %v2104_v38 }
 0x458   : > { %v3240_v42 = vpop.eup %3239 }
 0x459   : > { %v3242_v51 = vpop.eup %3241  ;;  %v2111_v35 = vmul.f32 0.6931472, %v3240_v42 }
 0x45a   : > { %v2093_v5 = vmul.f32 0.6931472, %v3242_v51 }
 0x45b   : > { %v3244_v11 = vpop.eup %3243  ;;  %v2117_v47 = vsel %vm2116_vm5, %v2114_v15, %v2111_v35 }
 0x45c   : > { %v2120_v57 = vmul.f32 0.6931472, %v3244_v11  ;;  %v2141_v37 = vadd.f32 %v2117_v47, %v1917_v61  ;;  %v2099_v26 = vsel %vm2098_vm7, %v2096_v7, %v2093_v5 }
 0x45d   : > { %v2139_v0 = vadd.f32 %v2099_v26, %v1915_v8 }
 0x45e   : > { %v3246_v60 = vpop.eup %3245  ;;  %v2126_v55 = vsel %vm2125_vm6, %v2123_v2, %v2120_v57 }
 0x45f   : > { %v2142_v63 = vadd.f32 %v2126_v55, %v1918_v10  ;;  %v2102_v44 = vmul.f32 0.6931472, %v3246_v60 }
 0x461   : > { %v2150_v40 = vpack.c.bf16 %v2142_v63, %v2141_v37  ;;  %v2108_v49 = vsel %vm2107_vm8, %v2105_v59, %v2102_v44 }
 0x462   : > { %v2140_v18 = vadd.f32 %v2108_v49, %v1916_v46 }
 0x464   : > { %v2149_v28 = vpack.c.bf16 %v2140_v18, %v2139_v0 }
 0x466   : > { %2948 = vmatprep.mubr.msk.bf16.mxu0 %vm537_vm1, %v2149_v28 }
 0x467   : > { %2949 = vmatmul.mubr.msk.bf16.gmra.mrb[36].mxu0 %vm537_vm1, %v2150_v40 }
 0x4f1   : > { %v2938_v13 = vpop.f32.mrb[24].mxu0 }
 0x4f2   : > { %v4388_v14 = vadd.f32 %v2938_v13, %v4385_v41  ;;  %v2248_v20 = vpop.f32.mrb[25].mxu0 }
 0x4f3   : > { %v4391_v34 = vadd.f32 %v4385_v41, %v2248_v20  ;;  %v2939_v30 = vpop.f32.mrb[26].mxu0 }
 0x4f4   : > { %v2329_v3 = vand.u32 2147483647, %v4388_v14  ;;  %v4395_v22 = vadd.f32 %v2939_v30, %v4385_v41  ;;  %v2251_v50 = vpop.f32.mrb[27].mxu0  ;;  %v2313_v7 = vmax.f32 %v4388_v14, 0.0 }
 0x4f5   : > { %v2327_v17 = vand.u32 2147483647, %v4391_v34  ;;  %v4399_v31 = vadd.f32 %v4385_v41, %v2251_v50  ;;  %v2311_v37 = vmax.f32 %v4391_v34, 0.0 }
 0x4f6   : > { %v2345_v58 = vsub.f32 0.0, %v2329_v3  ;;  %v2330_v56 = vand.u32 2147483647, %v4395_v22  ;;  %v2314_v13 = vmax.f32 %v4395_v22, 0.0 }
 0x4f7   : > { %v2343_v6 = vsub.f32 0.0, %v2327_v17  ;;  %v2328_v16 = vand.u32 2147483647, %v4399_v31  ;;  %v2312_v18 = vmax.f32 %v4399_v31, 0.0 }
 0x4f8   : > { %v2363_v33 = vmul.f32 1.442695, %v2345_v58  ;;  %v2346_v9 = vsub.f32 0.0, %v2330_v56 }
 0x4f9   : > { %v2359_v4 = vmul.f32 1.442695, %v2343_v6  ;;  %v2344_v25 = vsub.f32 0.0, %v2328_v16 }
 0x4fa   : > { %3247 = vpow2.f32 %v2363_v33  ;;  %v2365_v32 = vmul.f32 1.442695, %v2346_v9 }
 0x4fb   : > { %3249 = vpow2.f32 %v2359_v4  ;;  %v2361_v53 = vmul.f32 1.442695, %v2344_v25 }
 0x4fc   : > { %3251 = vpow2.f32 %v2365_v32 }
 0x4fd   : > { %3253 = vpow2.f32 %v2361_v53 }
 0x504   : > { %v3248_v45 = vpop.eup %3247 }
 0x505   : > { %v3250_v52 = vpop.eup %3249  ;;  %v2409_v29 = vadd.f32 1.0, %v3248_v45  ;;  %v2412_v42 = vmul.f32 -0.5, %v3248_v45  ;;  %v2415_v15 = vand.u32 2147483647, %v3248_v45 }
 0x506   : > { %v3252_v36 = vpop.eup %3251  ;;  %v2391_v21 = vadd.f32 1.0, %v3250_v52  ;;  %v2394_v54 = vmul.f32 -0.5, %v3250_v52  ;;  %v2397_v62 = vand.u32 2147483647, %v3250_v52 }
 0x507   : > { %v3254_v19 = vpop.eup %3253  ;;  %3255 = vlog2.f32 %v2409_v29  ;;  %v2418_v12 = vadd.f32 1.0, %v3252_v36  ;;  %v2421_v27 = vmul.f32 -0.5, %v3252_v36  ;;  %v2413_v48 = vadd.f32 1.0, %v2412_v42 }
 0x508   : > { %3257 = vlog2.f32 %v2391_v21  ;;  %v2400_v23 = vadd.f32 1.0, %v3254_v19  ;;  %v2403_v51 = vmul.f32 -0.5, %v3254_v19  ;;  %v2395_v35 = vadd.f32 1.0, %v2394_v54 }
 0x509   : > { %3259 = vlog2.f32 %v2418_v12  ;;  %v2422_v43 = vadd.f32 1.0, %v2421_v27  ;;  %v2424_v5 = vand.u32 2147483647, %v3252_v36  ;;  %v2406_v61 = vand.u32 2147483647, %v3254_v19 }
 0x50a   : > { %3261 = vlog2.f32 %v2400_v23  ;;  %v2404_v47 = vadd.f32 1.0, %v2403_v51  ;;  %v2396_v1 = vmul.f32 %v3250_v52, %v2395_v35  ;;  %v2414_v10 = vmul.f32 %v3248_v45, %v2413_v48 }
 0x50b   : > { %vm2398_vm1 = vcmp.lt.f32.partialorder %v2397_v62, 0.0004427343  ;;  %vm4404_vm9 = vcmp.lt.f32.partialorder %v2415_v15, 0.0004427343  ;;  %v2423_v63 = vmul.f32 %v3252_v36, %v2422_v43  ;;  %vm4411_vm10 = vcmp.lt.f32.partialorder %v2424_v5, 0.0004427343 }
 0x50c   : > { %v2405_v40 = vmul.f32 %v3254_v19, %v2404_v47  ;;  %vm2407_vm11 = vcmp.lt.f32.partialorder %v2406_v61, 0.0004427343 }
 0x511   : > { %v3256_v39 = vpop.eup %3255 }
 0x512   : > { %v3258_v38 = vpop.eup %3257  ;;  %v2411_v11 = vmul.f32 0.6931472, %v3256_v39 }
 0x513   : > { %v3260_v57 = vpop.eup %3259  ;;  %v2393_v2 = vmul.f32 0.6931472, %v3258_v38 }
 0x514   : > { %v2420_v60 = vmul.f32 0.6931472, %v3260_v57  ;;  %v3262_v55 = vpop.eup %3261  ;;  %v2417_v44 = vsel %vm4404_vm9, %v2414_v10, %v2411_v11  ;;  %v2942_v28 = vpop.f32.mrb[28].mxu0 }
 0x515   : > { %v2399_v26 = vsel %vm2398_vm1, %v2396_v1, %v2393_v2  ;;  %v2402_v46 = vmul.f32 0.6931472, %v3262_v55  ;;  %v4420_v20 = vadd.f32 %v2942_v28, %v4385_v41  ;;  %v2264_v34 = vpop.f32.mrb[29].mxu0  ;;  %v2537_v30 = vadd.f32 %v2417_v44, %v2313_v7 }
 0x516   : > { %v2535_v49 = vadd.f32 %v2399_v26, %v2311_v37  ;;  %v2426_v0 = vsel %vm4411_vm10, %v2423_v63, %v2420_v60  ;;  %v4423_v50 = vadd.f32 %v4385_v41, %v2264_v34  ;;  %v2943_v17 = vpop.f32.mrb[30].mxu0 }
 0x517   : > { %v2408_v14 = vsel %vm2407_vm11, %v2405_v40, %v2402_v46  ;;  %v2538_v58 = vadd.f32 %v2426_v0, %v2314_v13  ;;  %v2333_v56 = vand.u32 2147483647, %v4420_v20  ;;  %v4427_v31 = vadd.f32 %v2943_v17, %v4385_v41  ;;  %v2267_v6 = vpop.f32.mrb[31].mxu0 }
 0x518   : > { %v2536_v3 = vadd.f32 %v2408_v14, %v2312_v18  ;;  %v2552_v22 = vsel %vm2551_vm12, %v2535_v49, 0.0  ;;  %v2331_v33 = vand.u32 2147483647, %v4423_v50  ;;  %v4433_v9 = vadd.f32 %v4385_v41, %v2267_v6 }
 0x519   : > { %v2349_v25 = vsub.f32 0.0, %v2333_v56  ;;  %v2334_v32 = vand.u32 2147483647, %v4427_v31  ;;  %v2555_v53 = vsel %vm2551_vm12, %v2537_v30, 0.0  ;;  %v2557_v19 = vsel %vm2551_vm12, %v2538_v58, 0.0 }
 0x51a   : > { %v2553_v16 = vsel %vm2551_vm12, %v2536_v3, 0.0  ;;  %v2347_v45 = vsub.f32 0.0, %v2331_v33  ;;  %v2332_v52 = vand.u32 2147483647, %v4433_v9  ;;  %v2317_v18 = vmax.f32 %v4420_v20, 0.0 }
 0x51b   : > { %v2554_v4 = vadd.f32 %v2553_v16, %v2552_v22  ;;  %v2371_v36 = vmul.f32 1.442695, %v2349_v25  ;;  %v2350_v21 = vsub.f32 0.0, %v2334_v32  ;;  %v2315_v30 = vmax.f32 %v4423_v50, 0.0 }
 0x51c   : > { %v2367_v12 = vmul.f32 1.442695, %v2347_v45  ;;  %v2348_v23 = vsub.f32 0.0, %v2332_v52  ;;  %v2946_v54 = vpop.f32.mrb[32].mxu0  ;;  %v2318_v3 = vmax.f32 %v4427_v31, 0.0  ;;  %v2316_v56 = vmax.f32 %v4433_v9, 0.0 }
 0x51d   : > { %v2556_v29 = vadd.f32 %v2555_v53, %v2554_v4  ;;  %3263 = vpow2.f32 %v2371_v36  ;;  %v2373_v27 = vmul.f32 1.442695, %v2350_v21  ;;  %v4442_v51 = vadd.f32 %v2946_v54, %v4385_v41  ;;  %v2280_v35 = vpop.f32.mrb[33].mxu0 }
 0x51e   : > { %3265 = vpow2.f32 %v2367_v12  ;;  %v2369_v48 = vmul.f32 1.442695, %v2348_v23  ;;  %v4445_v62 = vadd.f32 %v4385_v41, %v2280_v35  ;;  %v2947_v39 = vpop.f32.mrb[34].mxu0 }
 0x51f   : > { %v4439_v42 = vadd.f32 %v2557_v19, %v2556_v29  ;;  %3267 = vpow2.f32 %v2373_v27  ;;  %v2337_v15 = vand.u32 2147483647, %v4442_v51  ;;  %v4449_v43 = vadd.f32 %v2947_v39, %v4385_v41  ;;  %v2283_v38 = vpop.f32.mrb[35].mxu0 }
 0x520   : > { %3269 = vpow2.f32 %v2369_v48  ;;  %v2335_v11 = vand.u32 2147483647, %v4445_v62  ;;  %v4453_v5 = vadd.f32 %v4385_v41, %v2283_v38  ;;  %v2321_v6 = vmax.f32 %v4442_v51, 0.0 }
 0x521   : > { %v2353_v47 = vsub.f32 0.0, %v2337_v15  ;;  %v2338_v57 = vand.u32 2147483647, %v4449_v43  ;;  %v2319_v22 = vmax.f32 %v4445_v62, 0.0  ;;  %v2322_v25 = vmax.f32 %v4449_v43, 0.0 }
 0x522   : > { %v2351_v2 = vsub.f32 0.0, %v2335_v11  ;;  %v2336_v1 = vand.u32 2147483647, %v4453_v5  ;;  %v2320_v32 = vmax.f32 %v4453_v5, 0.0 }
 0x523   : > { %v2379_v61 = vmul.f32 1.442695, %v2353_v47  ;;  %v2354_v7 = vsub.f32 0.0, %v2338_v57 }
 0x524   : > { %v2375_v10 = vmul.f32 1.442695, %v2351_v2  ;;  %v2352_v60 = vsub.f32 0.0, %v2336_v1 }
 0x525   : > { %3271 = vpow2.f32 %v2379_v61  ;;  %v2381_v55 = vmul.f32 1.442695, %v2354_v7 }
 0x526   : > { %3273 = vpow2.f32 %v2375_v10  ;;  %v2377_v59 = vmul.f32 1.442695, %v2352_v60 }
 0x527   : > { %v3264_v37 = vpop.eup %3263  ;;  %3275 = vpow2.f32 %v2381_v55 }
 0x528   : > { %v3266_v26 = vpop.eup %3265  ;;  %v2445_v63 = vadd.f32 1.0, %v3264_v37  ;;  %3277 = vpow2.f32 %v2377_v59  ;;  %v2448_v40 = vmul.f32 -0.5, %v3264_v37  ;;  %v2451_v28 = vand.u32 2147483647, %v3264_v37 }
 0x529   : > { %v3268_v44 = vpop.eup %3267  ;;  %v2427_v8 = vadd.f32 1.0, %v3266_v26  ;;  %v2430_v13 = vmul.f32 -0.5, %v3266_v26  ;;  %v2433_v14 = vand.u32 2147483647, %v3266_v26 }
 0x52a   : > { %v3270_v46 = vpop.eup %3269  ;;  %3279 = vlog2.f32 %v2445_v63  ;;  %v2454_v49 = vadd.f32 1.0, %v3268_v44  ;;  %v2449_v34 = vadd.f32 1.0, %v2448_v40  ;;  %v2457_v58 = vmul.f32 -0.5, %v3268_v44 }
 0x52b   : > { %3281 = vlog2.f32 %v2427_v8  ;;  %v2436_v0 = vadd.f32 1.0, %v3270_v46  ;;  %v2439_v33 = vmul.f32 -0.5, %v3270_v46  ;;  %vm4469_vm13 = vcmp.lt.f32.partialorder %v2451_v28, 0.0004427343 }
 0x52c   : > { %3283 = vlog2.f32 %v2454_v49  ;;  %v2431_v45 = vadd.f32 1.0, %v2430_v13  ;;  %vm4473_vm14 = vcmp.lt.f32.partialorder %v2433_v14, 0.0004427343  ;;  %v2450_v36 = vmul.f32 %v3264_v37, %v2449_v34 }
 0x52d   : > { %3285 = vlog2.f32 %v2436_v0  ;;  %v2458_v12 = vadd.f32 1.0, %v2457_v58  ;;  %v2460_v23 = vand.u32 2147483647, %v3268_v44  ;;  %v2442_v54 = vand.u32 2147483647, %v3270_v46 }
 0x52e   : > { %v2440_v35 = vadd.f32 1.0, %v2439_v33  ;;  %v2432_v11 = vmul.f32 %v3266_v26, %v2431_v45 }
 0x52f   : > { %v3272_v17 = vpop.eup %3271  ;;  %v2459_v60 = vmul.f32 %v3268_v44, %v2458_v12  ;;  %vm4485_vm15 = vcmp.lt.f32.partialorder %v2460_v23, 0.0004427343  ;;  %vm4489_vm0 = vcmp.lt.f32.partialorder %v2442_v54, 0.0004427343 }
 0x530   : > { %v4463_v16 = vpop.eup %3273  ;;  %v2481_v4 = vadd.f32 1.0, %v3272_v17  ;;  %v2484_v21 = vmul.f32 -0.5, %v3272_v17  ;;  %v2487_v47 = vand.u32 2147483647, %v3272_v17  ;;  %v2441_v63 = vmul.f32 %v3270_v46, %v2440_v35 }
 0x531   : > { %v4467_v50 = vpop.eup %3275  ;;  %v2463_v52 = vadd.f32 1.0, %v4463_v16  ;;  %v2466_v48 = vmul.f32 -0.5, %v4463_v16  ;;  %v2469_v57 = vand.u32 2147483647, %v4463_v16 }
 0x532   : > { %v4478_v29 = vpop.eup %3277  ;;  %3287 = vlog2.f32 %v2481_v4  ;;  %v2490_v19 = vadd.f32 1.0, %v4467_v50  ;;  %v2485_v61 = vadd.f32 1.0, %v2484_v21  ;;  %v2493_v7 = vmul.f32 -0.5, %v4467_v50 }
 0x533   : > { %3289 = vlog2.f32 %v2463_v52  ;;  %v2472_v39 = vadd.f32 1.0, %v4478_v29  ;;  %v2467_v8 = vadd.f32 1.0, %v2466_v48  ;;  %v2475_v40 = vmul.f32 -0.5, %v4478_v29 }
 0x534   : > { %v3280_v27 = vpop.eup %3279  ;;  %3291 = vlog2.f32 %v2490_v19  ;;  %v2496_v28 = vand.u32 2147483647, %v4467_v50  ;;  %v2486_v13 = vmul.f32 %v3272_v17, %v2485_v61  ;;  %vm4499_vm2 = vcmp.lt.f32.partialorder %v2487_v47, 0.0004427343 }
 0x535   : > { %v3282_v15 = vpop.eup %3281  ;;  %v2447_v38 = vmul.f32 0.6931472, %v3280_v27  ;;  %3293 = vlog2.f32 %v2472_v39  ;;  %vm4503_vm3 = vcmp.lt.f32.partialorder %v2469_v57, 0.0004427343  ;;  %v2494_v46 = vadd.f32 1.0, %v2493_v7 }
 0x536   : > { %v3284_v2 = vpop.eup %3283  ;;  %v2429_v1 = vmul.f32 0.6931472, %v3282_v15  ;;  %v2478_v4 = vand.u32 2147483647, %v4478_v29  ;;  %v2476_v52 = vadd.f32 1.0, %v2475_v40  ;;  %v2468_v12 = vmul.f32 %v4463_v16, %v2467_v8 }
 0x537   : > { %v2456_v10 = vmul.f32 0.6931472, %v3284_v2  ;;  %v3286_v37 = vpop.eup %3285  ;;  %v2453_v49 = vsel %vm4469_vm13, %v2450_v36, %v2447_v38  ;;  %vm4517_vm4 = vcmp.lt.f32.partialorder %v2496_v28, 0.0004427343  ;;  %v2495_v15 = vmul.f32 %v4467_v50, %v2494_v46 }
 0x538   : > { %v2435_v26 = vsel %vm4473_vm14, %v2432_v11, %v2429_v1  ;;  %v2438_v0 = vmul.f32 0.6931472, %v3286_v37  ;;  %v2541_v53 = vadd.f32 %v2453_v49, %v2317_v18  ;;  %vm4531_vm5 = vcmp.lt.f32.partialorder %v2478_v4, 0.0004427343 }
 0x539   : > { %v2539_v44 = vadd.f32 %v2435_v26, %v2315_v30  ;;  %v2462_v33 = vsel %vm4485_vm15, %v2459_v60, %v2456_v10  ;;  %v2477_v57 = vmul.f32 %v4478_v29, %v2476_v52 }
 0x53a   : > { %v2444_v30 = vsel %vm4489_vm0, %v2441_v63, %v2438_v0  ;;  %v2950_v36 = vpop.f32.mrb[36].mxu0  ;;  %v2542_v20 = vadd.f32 %v2462_v33, %v2318_v3  ;;  %v2563_v31 = vsel %vm2551_vm12, %v2541_v53, 0.0 }
 0x53b   : > { %v2559_v58 = vsel %vm2551_vm12, %v2539_v44, 0.0  ;;  %v2540_v9 = vadd.f32 %v2444_v30, %v2316_v56  ;;  %v4522_v54 = vadd.f32 %v2950_v36, %v4385_v41  ;;  %v2296_v27 = vpop.f32.mrb[37].mxu0 }
 0x53c   : > { %v3288_v17 = vpop.eup %3287  ;;  %v2560_v45 = vadd.f32 %v2559_v58, %v4439_v42  ;;  %v4528_v56 = vadd.f32 %v4385_v41, %v2296_v27  ;;  %v2951_v48 = vpop.f32.mrb[38].mxu0  ;;  %v2565_v10 = vsel %vm2551_vm12, %v2542_v20, 0.0 }
 0x53d   : > { %v3290_v21 = vpop.eup %3289  ;;  %v2483_v19 = vmul.f32 0.6931472, %v3288_v17  ;;  %v2561_v42 = vsel %vm2551_vm12, %v2540_v9, 0.0  ;;  %v2299_v11 = vpop.f32.mrb[39].mxu0  ;;  %v2341_v2 = vand.u32 2147483647, %v4522_v54  ;;  %v4552_v63 = vadd.f32 %v2951_v48, %v4385_v41 }
 0x53e   : > { %v3292_v35 = vpop.eup %3291  ;;  %v2465_v18 = vmul.f32 0.6931472, %v3290_v21  ;;  %v2562_v16 = vadd.f32 %v2561_v42, %v2560_v45  ;;  %v2339_v59 = vand.u32 2147483647, %v4528_v56  ;;  %v4560_v0 = vadd.f32 %v4385_v41, %v2299_v11 }
 0x53f   : > { %v2492_v39 = vmul.f32 0.6931472, %v3292_v35  ;;  %v3294_v47 = vpop.eup %3293  ;;  %v2489_v61 = vsel %vm4499_vm2, %v2486_v13, %v2483_v19  ;;  %v2357_v55 = vsub.f32 0.0, %v2341_v2  ;;  %v2342_v44 = vand.u32 2147483647, %v4552_v63 }
 0x540   : > { %v2471_v3 = vsel %vm4503_vm3, %v2468_v12, %v2465_v18  ;;  %v2564_v1 = vadd.f32 %v2563_v31, %v2562_v16  ;;  %v2474_v7 = vmul.f32 0.6931472, %v3294_v47  ;;  %v2545_v62 = vadd.f32 %v2489_v61, %v2321_v6 }
 0x541   : > { %v2543_v50 = vadd.f32 %v2471_v3, %v2319_v22  ;;  %v2498_v60 = vsel %vm4517_vm4, %v2495_v15, %v2492_v39  ;;  %v2387_v8 = vmul.f32 1.442695, %v2357_v55  ;;  %v2355_v40 = vsub.f32 0.0, %v2339_v59 }
 0x542   : > { %v2566_v37 = vadd.f32 %v2565_v10, %v2564_v1  ;;  %v2480_v26 = vsel %vm4531_vm5, %v2477_v57, %v2474_v7  ;;  %v2546_v28 = vadd.f32 %v2498_v60, %v2322_v25  ;;  %v2358_v6 = vsub.f32 0.0, %v2342_v44 }
 0x543   : > { %v2567_v29 = vsel %vm2551_vm12, %v2543_v50, 0.0  ;;  %v2544_v22 = vadd.f32 %v2480_v26, %v2320_v32  ;;  %3295 = vpow2.f32 %v2387_v8  ;;  %v2383_v14 = vmul.f32 1.442695, %v2355_v40 }
 0x544   : > { %v2568_v49 = vadd.f32 %v2567_v29, %v2566_v37  ;;  %v2340_v5 = vand.u32 2147483647, %v4560_v0  ;;  %v2571_v32 = vsel %vm2551_vm12, %v2545_v62, 0.0  ;;  %v2389_v46 = vmul.f32 1.442695, %v2358_v6 }
 0x545   : > { %v2569_v13 = vsel %vm2551_vm12, %v2544_v22, 0.0  ;;  %3297 = vpow2.f32 %v2383_v14  ;;  %v2573_v41 = vsel %vm2551_vm12, %v2546_v28, 0.0  ;;  %v2323_v38 = vmax.f32 %v4528_v56, 0.0 }
 0x546   : > { %v2570_v51 = vadd.f32 %v2569_v13, %v2568_v49  ;;  %v2356_v58 = vsub.f32 0.0, %v2340_v5  ;;  %3299 = vpow2.f32 %v2389_v46  ;;  %v2325_v7 = vmax.f32 %v4522_v54, 0.0 }
 0x547   : > { %v2324_v29 = vmax.f32 %v4560_v0, 0.0  ;;  %v2326_v8 = vmax.f32 %v4552_v63, 0.0 }
 0x548   : > { %v2572_v34 = vadd.f32 %v2571_v32, %v2570_v51  ;;  %v2385_v43 = vmul.f32 1.442695, %v2356_v58 }
 0x54a   : > { %v2574_v33 = vadd.f32 %v2573_v41, %v2572_v34  ;;  %3301 = vpow2.f32 %v2385_v43  ;;  %v2591_v34 = vstv %s3394_s24  ;;  %s4710_s24 = smov (!%p412_p4, %s3394_s24), 1 }
 0x54b   : > { %v2592_v63 = vadd.s32 %v2591_v34, %v3820_v24  ;;  %s2663_s29 = sshll.u32 %s4710_s24, 3 }
 0x54c   : > { %s415_s15 = scalar_lea.vmem %s4598_s12, %s2663_s29 }
 0x54d   : > { %v3296_v25 = vpop.eup %3295  ;;  %vm2593_vm9 = vcmp.lt.s32.totalorder %v2592_v63, 2 }
 0x54e   : > { %v2517_v30 = vadd.f32 1.0, %v3296_v25  ;;  %v2520_v21 = vmul.f32 -0.5, %v3296_v25  ;;  %v2523_v18 = vand.u32 2147483647, %v3296_v25 }
 0x54f   : > { %v3298_v4 = vpop.eup %3297 }
 0x550   : > { %v2499_v17 = vadd.f32 1.0, %v3298_v4  ;;  %3303 = vlog2.f32 %v2517_v30  ;;  %v3300_v53 = vpop.eup %3299  ;;  %v2502_v52 = vmul.f32 -0.5, %v3298_v4  ;;  %v2505_v23 = vand.u32 2147483647, %v3298_v4 }
 0x551   : > { %v2526_v45 = vadd.f32 1.0, %v3300_v53  ;;  %v2529_v12 = vmul.f32 -0.5, %v3300_v53  ;;  %v2521_v42 = vadd.f32 1.0, %v2520_v21  ;;  %v2532_v3 = vand.u32 2147483647, %v3300_v53 }
 0x552   : > { %3305 = vlog2.f32 %v2499_v17  ;;  %v2503_v19 = vadd.f32 1.0, %v2502_v52  ;;  %vm2506_vm6 = vcmp.lt.f32.partialorder %v2505_v23, 0.0004427343  ;;  %vm2524_vm7 = vcmp.lt.f32.partialorder %v2523_v18, 0.0004427343 }
 0x553   : > { %3307 = vlog2.f32 %v2526_v45  ;;  %v2530_v39 = vadd.f32 1.0, %v2529_v12  ;;  %v2522_v2 = vmul.f32 %v3296_v25, %v2521_v42  ;;  %vm2533_vm8 = vcmp.lt.f32.partialorder %v2532_v3, 0.0004427343 }
 0x554   : > { %v3302_v9 = vpop.eup %3301  ;;  %v2504_v16 = vmul.f32 %v3298_v4, %v2503_v19 }
 0x555   : > { %v2508_v36 = vadd.f32 1.0, %v3302_v9  ;;  %v2511_v27 = vmul.f32 -0.5, %v3302_v9  ;;  %v2514_v57 = vand.u32 2147483647, %v3302_v9  ;;  %v2531_v10 = vmul.f32 %v3300_v53, %v2530_v39 }
 0x557   : > { %3309 = vlog2.f32 %v2508_v36  ;;  %v2512_v11 = vadd.f32 1.0, %v2511_v27  ;;  %vm2515_vm1 = vcmp.lt.f32.partialorder %v2514_v57, 0.0004427343 }
 0x559   : > { %v2513_v37 = vmul.f32 %v3302_v9, %v2512_v11 }
 0x55a   : > { %v3304_v35 = vpop.eup %3303 }
 0x55b   : > { %v2519_v15 = vmul.f32 0.6931472, %v3304_v35 }
 0x55c   : > { %v3306_v20 = vpop.eup %3305 }
 0x55d   : > { %v2501_v48 = vmul.f32 0.6931472, %v3306_v20  ;;  %v3308_v47 = vpop.eup %3307  ;;  %v2525_v60 = vsel %vm2524_vm7, %v2522_v2, %v2519_v15 }
 0x55e   : > { %v2528_v61 = vmul.f32 0.6931472, %v3308_v47  ;;  %v2549_v22 = vadd.f32 %v2525_v60, %v2325_v7 }
 0x55f   : > { %v2507_v31 = vsel %vm2506_vm6, %v2504_v16, %v2501_v48 }
 0x560   : > { %v2547_v1 = vadd.f32 %v2507_v31, %v2323_v38  ;;  %v2534_v26 = vsel %vm2533_vm8, %v2531_v10, %v2528_v61  ;;  %v2579_v28 = vsel %vm2551_vm12, %v2549_v22, 0.0 }
 0x561   : > { %v3310_v50 = vpop.eup %3309  ;;  %v2550_v54 = vadd.f32 %v2534_v26, %v2326_v8 }
 0x562   : > { %v2575_v55 = vsel %vm2551_vm12, %v2547_v1, 0.0  ;;  %v2510_v59 = vmul.f32 0.6931472, %v3310_v50 }
 0x563   : > { %v2576_v56 = vadd.f32 %v2575_v55, %v2574_v33  ;;  %v2581_v14 = vsel %vm2551_vm12, %v2550_v54, 0.0 }
 0x564   : > { %v2516_v62 = vsel %vm2515_vm1, %v2513_v37, %v2510_v59 }
 0x565   : > { %v2548_v40 = vadd.f32 %v2516_v62, %v2324_v29 }
 0x567   : > { %v2577_v49 = vsel %vm2551_vm12, %v2548_v40, 0.0 }
 0x568   : > { %v2578_v44 = vadd.f32 %v2577_v49, %v2576_v56 }
 0x56a   : > { %v2580_v13 = vadd.f32 %v2579_v28, %v2578_v44 }
 0x56c   : > { %v2582_v0 = vadd.f32 %v2581_v14, %v2580_v13 }
 0x56e   : > { %v2583_v51 = vrot.slane %v2582_v0, 4 }
 0x570   : > { %v2584_v6 = vadd.f32 %v2583_v51, %v2582_v0 }
 0x572   : > { %v2585_v5 = vrot.slane %v2584_v6, 2 }
 0x574   : > { %v2586_v32 = vadd.f32 %v2585_v5, %v2584_v6 }
 0x576   : > { %v2587_v46 = vrot.slane %v2586_v32, 1 }
 0x578   : > { %v2588_v58 = vadd.f32 %v2587_v46, %v2586_v32 }
 0x57a   : > { %v2730_v41 = vadd.f32 -1.0, %v2588_v58 }
 0x57c   : > { %v2595_v33 = vand.u32 2147483647, %v2730_v41 }
 0x57e   : > { %v2596_v43 = vsel %vm2593_vm9, %v2595_v33, 0.0 }
 0x57f   : > { %2960 = vpush %v2596_v43 }
 0x5b0   : > { %s2961_s30 = spop %2960 }
 0x5b1   : > { %s2599_s16 = smul.f32 0.5, %s2961_s30 }
 0x5b3   : > { %v2600_v25 = vstv %s2599_s16 }
 0x5b4   : > { %2601 = vst [vmem:[%s415_s15] sm:$0xff] %v2600_v25 }
 0x5b5 PF: > { %s24_s23 = sadd.s32 1, %s3317_s23  }
 0x5b6   : > { %p21_p5 = scmp.ge.s32.totalorder %s24_s23, 4  }
 0x5b8   :  { %23 = sbr.rel (!%p21_p5) target bundleno = 3 (0x3), region = 99 }

</bundles_post_ra>
